<compile_context>
chip_gen: v5e
topology: v5e:2x2
jax: 0.10.0
libtpu: 0.0.40
codegen_flags: <defaults>
</compile_context>

<pallas_src>
import functools

import jax
import jax.numpy as jnp
from jax.experimental import pallas as pl
from jax.experimental.pallas import tpu as pltpu


def _round_up(v, m):
    return (v + m - 1) // m * m


def _vision_rope_kernel(x_ref, ph_ref, pw_ref, fh_ref, fw_ref, rot_ref, o_ref, *,
                        scale):
    x = x_ref[0]                           # (H, TN, D), input dtype
    pos_h = ph_ref[0]                      # (TN, 1) float32
    pos_w = pw_ref[0]                      # (TN, 1) float32
    fh = fh_ref[...]                       # (1, D) float32 (zeros in the w half)
    fw = fw_ref[...]                       # (1, D) float32 (zeros in the h half)

    # Angles: each half of the lane dim picks up its own position index.
    angle = pos_h * fh + pos_w * fw        # (TN, D) float32
    cos = jnp.cos(angle) * scale
    sin = jnp.sin(angle) * scale

    h, tn, d = x.shape
    xf = x.astype(jnp.float32)
    # rotate_half(x) == x @ R with R a signed even/odd-swap permutation; done on
    # the MXU so the VPU path stays free of cross-lane shuffles.
    xr = jnp.dot(xf.reshape(h * tn, d), rot_ref[...],
                 preferred_element_type=jnp.float32).reshape(h, tn, d)

    out = xf * cos[None, :, :] + xr * sin[None, :, :]
    o_ref[0] = out.astype(o_ref.dtype)


def vision_rotary_embedding(x, grid, freqs_h_base, freqs_w_base, *,
                            scale=1.0, block_n=256):
    """Apply 2D vision RoPE.

    x: (B, H, N, D); grid: (B, 3, N) integer positions (w, h, t rows);
    freqs_h_base / freqs_w_base: (D//4,) base frequencies 1/theta**(2k/dim).
    Returns rotated x, shape (B, H, N, D).
    """
    b, h, n, d = x.shape
    dim = d // 2
    assert dim % 2 == 0
    assert freqs_h_base.shape == (dim // 2,)
    assert freqs_w_base.shape == (dim // 2,)

    # Per-token integer positions with the time index folded in (cached path).
    pos_w = (grid[:, 0] + grid[:, 2]).astype(jnp.float32)        # (B, N)
    pos_h = (grid[:, 1] + grid[:, 2]).astype(jnp.float32)        # (B, N)

    # Frequency row vectors over the full lane dim D = [h-half | w-half]; each
    # base frequency repeated twice (matches repeat('... n -> ... (n r)', r=2)).
    fh_rep = jnp.repeat(freqs_h_base.astype(jnp.float32), 2)     # (dim,)
    fw_rep = jnp.repeat(freqs_w_base.astype(jnp.float32), 2)     # (dim,)
    zeros = jnp.zeros((dim,), jnp.float32)
    fh_full = jnp.concatenate([fh_rep, zeros]).reshape(1, d)
    fw_full = jnp.concatenate([zeros, fw_rep]).reshape(1, d)

    # rotate_half as a signed permutation matrix:
    #   (x @ R)[..., 2i] = -x[..., 2i+1],  (x @ R)[..., 2i+1] = x[..., 2i]
    col = jnp.arange(d)
    row = jnp.where(col % 2 == 0, col + 1, col - 1)
    val = jnp.where(col % 2 == 0, -1.0, 1.0).astype(jnp.float32)
    rot = jnp.zeros((d, d), jnp.float32).at[row, col].set(val)

    # Pad N (sublane dim of every block) up to a multiple of the tile.
    tn = max(8, min(block_n, _round_up(n, 8)))
    n_pad = _round_up(n, tn)
    if n_pad != n:
        pad = n_pad - n
        x = jnp.pad(x, ((0, 0), (0, 0), (0, pad), (0, 0)))
        pos_w = jnp.pad(pos_w, ((0, 0), (0, pad)))
        pos_h = jnp.pad(pos_h, ((0, 0), (0, pad)))

    pos_h = pos_h.reshape(b, n_pad, 1)
    pos_w = pos_w.reshape(b, n_pad, 1)

    kernel = functools.partial(_vision_rope_kernel, scale=float(scale))

    out = pl.pallas_call(
        kernel,
        out_shape=jax.ShapeDtypeStruct((b, h, n_pad, d), x.dtype),
        grid_spec=pltpu.PrefetchScalarGridSpec(
            num_scalar_prefetch=0,
            grid=(b, n_pad // tn),
            in_specs=[
                pl.BlockSpec((1, h, tn, d), lambda bi, ni: (bi, 0, ni, 0)),
                pl.BlockSpec((1, tn, 1), lambda bi, ni: (bi, ni, 0)),
                pl.BlockSpec((1, tn, 1), lambda bi, ni: (bi, ni, 0)),
                pl.BlockSpec((1, d), lambda bi, ni: (0, 0)),
                pl.BlockSpec((1, d), lambda bi, ni: (0, 0)),
                pl.BlockSpec((d, d), lambda bi, ni: (0, 0)),
            ],
            out_specs=pl.BlockSpec((1, h, tn, d), lambda bi, ni: (bi, 0, ni, 0)),
        ),
        compiler_params=pltpu.CompilerParams(
            dimension_semantics=("parallel", "parallel")),
    )(x, pos_h, pos_w, fh_full, fw_full, rot)

    return out[:, :, :n, :]


# ----------------------------- reference (pure JAX) -------------------------

def _rotate_half(x):
    xp = x.reshape(*x.shape[:-1], x.shape[-1] // 2, 2)
    x1 = xp[..., 0]
    x2 = xp[..., 1]
    xp = jnp.stack([-x2, x1], axis=-1)
    return xp.reshape(*x.shape)


def _build_freq_cache(dim, theta, max_len):
    """'normal' RoPE: base freqs and cached table cache[p] = p * freq (r=2 repeat)."""
    base = 1.0 / (theta ** (jnp.arange(0, dim, 2, dtype=jnp.float32) / dim))
    t = jnp.arange(max_len, dtype=jnp.float32)
    table = t[:, None] * base[None, :]                 # (max_len, dim // 2)
    return base, jnp.repeat(table, 2, axis=-1)         # (max_len, dim)


def _reference(x, grid, freqs_h_cached, freqs_w_cached, scale=1.0):
    idx_w = grid[:, 0] + grid[:, 2]
    idx_h = grid[:, 1] + grid[:, 2]
    fw = freqs_w_cached[idx_w]                         # (B, N, dim)
    fh = freqs_h_cached[idx_h]                         # (B, N, dim)
    freqs = jnp.concatenate([fh, fw], axis=-1)         # (B, N, D)
    cos = (jnp.cos(freqs) * scale)[:, None]            # (B, 1, N, D)
    sin = (jnp.sin(freqs) * scale)[:, None]
    return x * cos + _rotate_half(x) * sin


# ----------------------------------- demo -----------------------------------

if __name__ == "__main__":
    key = jax.random.PRNGKey(0)

    batch = 2
    n_head = 4
    img_h, img_w = 8, 8
    n_tokens = img_h * img_w          # 64
    head_dim = 128                    # D; dim = 64
    dim = head_dim // 2
    theta = 10000
    max_cached_len = 64

    # host-side precompute that the module does in __init__ ('normal' freqs)
    freq_base, freq_cached = _build_freq_cache(dim, theta, max_cached_len)
    freqs_h_base = freq_base
    freqs_w_base = freq_base

    # grid: (B, 3, N) — w varies fastest, h slower, t = 0 (image case)
    hh, ww = jnp.meshgrid(jnp.arange(img_h), jnp.arange(img_w), indexing="ij")
    w_idx = ww.reshape(-1)
    h_idx = hh.reshape(-1)
    t_idx = jnp.zeros_like(w_idx)
    grid1 = jnp.stack([w_idx, h_idx, t_idx], axis=0)            # (3, N)
    grid = jnp.broadcast_to(grid1[None], (batch, 3, n_tokens)).astype(jnp.int32)

    x = jax.random.normal(key, (batch, n_head, n_tokens, head_dim),
                          dtype=jnp.float32)

    out = vision_rotary_embedding(x, grid, freqs_h_base, freqs_w_base,
                                  scale=1.0, block_n=32)
    out = jax.block_until_ready(out)

    ref = _reference(x, grid, freq_cached, freq_cached, scale=1.0)
    assert out.shape == x.shape
    assert jnp.allclose(out, ref, atol=1e-4, rtol=1e-4), "mismatch vs reference"

    print("KERNEL_OK")
</pallas_src>

<mosaic_0001>
module attributes {stable_mosaic.version = 11 : i64} {
  func.func @_vision_rope_kernel(%arg0: i32, %arg1: i32, %arg2: memref<1x4x32x128xf32, #tpu.memory_space<vmem>>, %arg3: memref<1x32x1xf32, #tpu.memory_space<vmem>>, %arg4: memref<1x32x1xf32, #tpu.memory_space<vmem>>, %arg5: memref<1x128xf32, #tpu.memory_space<vmem>>, %arg6: memref<1x128xf32, #tpu.memory_space<vmem>>, %arg7: memref<128x128xf32, #tpu.memory_space<vmem>>, %arg8: memref<1x4x32x128xf32, #tpu.memory_space<vmem>>) attributes {dimension_semantics = [#tpu.dimension_semantics<parallel>, #tpu.dimension_semantics<parallel>], iteration_bounds = array<i64: 2, 2>, scalar_prefetch = 0 : i64, scratch_operands = 0 : i64, tpu.core_type = #tpu.core_type<tc>, window_params = [{transform_indices = @transform_0, window_bounds = array<i64: 1, 4, 32, 128>}, {transform_indices = @transform_1, window_bounds = array<i64: 1, 32, 1>}, {transform_indices = @transform_2, window_bounds = array<i64: 1, 32, 1>}, {pipeline_mode = #tpu.pipeline_mode<synchronous>, transform_indices = @transform_3, window_bounds = array<i64: 1, 128>}, {pipeline_mode = #tpu.pipeline_mode<synchronous>, transform_indices = @transform_4, window_bounds = array<i64: 1, 128>}, {pipeline_mode = #tpu.pipeline_mode<synchronous>, transform_indices = @transform_5, window_bounds = array<i64: 128, 128>}, {transform_indices = @transform_6, window_bounds = array<i64: 1, 4, 32, 128>}]} {
    %c0 = arith.constant 0 : index
    %c0_0 = arith.constant 0 : index
    %c0_1 = arith.constant 0 : index
    %c0_2 = arith.constant 0 : index
    %0 = vector.load %arg2[%c0, %c0_0, %c0_1, %c0_2] : memref<1x4x32x128xf32, #tpu.memory_space<vmem>>, vector<1x4x32x128xf32>
    %1 = vector.shape_cast %0 : vector<1x4x32x128xf32> to vector<4x32x128xf32>
    %c0_3 = arith.constant 0 : index
    %c0_4 = arith.constant 0 : index
    %c0_5 = arith.constant 0 : index
    %2 = vector.load %arg3[%c0_3, %c0_4, %c0_5] : memref<1x32x1xf32, #tpu.memory_space<vmem>>, vector<1x32x1xf32>
    %3 = vector.shape_cast %2 : vector<1x32x1xf32> to vector<32x1xf32>
    %c0_6 = arith.constant 0 : index
    %c0_7 = arith.constant 0 : index
    %c0_8 = arith.constant 0 : index
    %4 = vector.load %arg4[%c0_6, %c0_7, %c0_8] : memref<1x32x1xf32, #tpu.memory_space<vmem>>, vector<1x32x1xf32>
    %5 = vector.shape_cast %4 : vector<1x32x1xf32> to vector<32x1xf32>
    %c0_9 = arith.constant 0 : index
    %c0_10 = arith.constant 0 : index
    %6 = vector.load %arg5[%c0_9, %c0_10] : memref<1x128xf32, #tpu.memory_space<vmem>>, vector<1x128xf32>
    %c0_11 = arith.constant 0 : index
    %c0_12 = arith.constant 0 : index
    %7 = vector.load %arg6[%c0_11, %c0_12] : memref<1x128xf32, #tpu.memory_space<vmem>>, vector<1x128xf32>
    %8 = vector.broadcast %3 : vector<32x1xf32> to vector<32x128xf32>
    %9 = vector.broadcast %6 : vector<1x128xf32> to vector<32x128xf32>
    %10 = arith.mulf %8, %9 : vector<32x128xf32>
    %11 = vector.broadcast %5 : vector<32x1xf32> to vector<32x128xf32>
    %12 = vector.broadcast %7 : vector<1x128xf32> to vector<32x128xf32>
    %13 = arith.mulf %11, %12 : vector<32x128xf32>
    %14 = arith.addf %10, %13 : vector<32x128xf32>
    %15 = math.cos %14 : vector<32x128xf32>
    %cst = arith.constant 1.000000e+00 : f32
    %16 = vector.broadcast %cst : f32 to vector<32x128xf32>
    %17 = arith.mulf %15, %16 : vector<32x128xf32>
    %18 = math.sin %14 : vector<32x128xf32>
    %cst_13 = arith.constant 1.000000e+00 : f32
    %19 = vector.broadcast %cst_13 : f32 to vector<32x128xf32>
    %20 = arith.mulf %18, %19 : vector<32x128xf32>
    %21 = vector.shape_cast %1 : vector<4x32x128xf32> to vector<128x128xf32>
    %c0_14 = arith.constant 0 : index
    %c0_15 = arith.constant 0 : index
    %22 = vector.load %arg7[%c0_14, %c0_15] : memref<128x128xf32, #tpu.memory_space<vmem>>, vector<128x128xf32>
    %cst_16 = arith.constant dense<0.000000e+00> : vector<128x128xf32>
    %23 = tpu.matmul %21, %22, %cst_16 {dimension_numbers = #tpu.dot_dimension_numbers<[1], [0], [0], [1], [0, 0, 1, 1], [], []>} : vector<128x128xf32>, vector<128x128xf32>, vector<128x128xf32> -> vector<128x128xf32>
    %24 = vector.shape_cast %23 : vector<128x128xf32> to vector<4x32x128xf32>
    %25 = vector.shape_cast %17 : vector<32x128xf32> to vector<1x32x128xf32>
    %26 = vector.broadcast %25 : vector<1x32x128xf32> to vector<4x32x128xf32>
    %27 = arith.mulf %1, %26 : vector<4x32x128xf32>
    %28 = vector.shape_cast %20 : vector<32x128xf32> to vector<1x32x128xf32>
    %29 = vector.broadcast %28 : vector<1x32x128xf32> to vector<4x32x128xf32>
    %30 = arith.mulf %24, %29 : vector<4x32x128xf32>
    %31 = arith.addf %27, %30 : vector<4x32x128xf32>
    %c0_17 = arith.constant 0 : index
    %c0_18 = arith.constant 0 : index
    %c0_19 = arith.constant 0 : index
    %c0_20 = arith.constant 0 : index
    %32 = vector.load %arg8[%c0_17, %c0_18, %c0_19, %c0_20] : memref<1x4x32x128xf32, #tpu.memory_space<vmem>>, vector<1x4x32x128xf32>
    %33 = vector.shape_cast %32 : vector<1x4x32x128xf32> to vector<4x32x128xf32>
    %34 = vector.shape_cast %31 : vector<4x32x128xf32> to vector<1x4x32x128xf32>
    tpu.vector_store %arg8[%c0_17, %c0_18, %c0_19, %c0_20], %34 {strides = array<i32>} : memref<1x4x32x128xf32, #tpu.memory_space<vmem>>, vector<1x4x32x128xf32>,
    return
  }
  func.func @transform_0(%arg0: i32, %arg1: i32) -> (i32, i32, i32, i32) {
    %c0_i32 = arith.constant 0 : i32
    %c0_i32_0 = arith.constant 0 : i32
    %c0_i32_1 = arith.constant 0 : i32
    return %arg0, %c0_i32, %arg1, %c0_i32_0 : i32, i32, i32, i32
  }
  func.func @transform_1(%arg0: i32, %arg1: i32) -> (i32, i32, i32) {
    %c0_i32 = arith.constant 0 : i32
    %c0_i32_0 = arith.constant 0 : i32
    return %arg0, %arg1, %c0_i32 : i32, i32, i32
  }
  func.func @transform_2(%arg0: i32, %arg1: i32) -> (i32, i32, i32) {
    %c0_i32 = arith.constant 0 : i32
    %c0_i32_0 = arith.constant 0 : i32
    return %arg0, %arg1, %c0_i32 : i32, i32, i32
  }
  func.func @transform_3(%arg0: i32, %arg1: i32) -> (i32, i32) {
    %c0_i32 = arith.constant 0 : i32
    %c0_i32_0 = arith.constant 0 : i32
    %c0_i32_1 = arith.constant 0 : i32
    return %c0_i32, %c0_i32_0 : i32, i32
  }
  func.func @transform_4(%arg0: i32, %arg1: i32) -> (i32, i32) {
    %c0_i32 = arith.constant 0 : i32
    %c0_i32_0 = arith.constant 0 : i32
    %c0_i32_1 = arith.constant 0 : i32
    return %c0_i32, %c0_i32_0 : i32, i32
  }
  func.func @transform_5(%arg0: i32, %arg1: i32) -> (i32, i32) {
    %c0_i32 = arith.constant 0 : i32
    %c0_i32_0 = arith.constant 0 : i32
    %c0_i32_1 = arith.constant 0 : i32
    return %c0_i32, %c0_i32_0 : i32, i32
  }
  func.func @transform_6(%arg0: i32, %arg1: i32) -> (i32, i32, i32, i32) {
    %c0_i32 = arith.constant 0 : i32
    %c0_i32_0 = arith.constant 0 : i32
    %c0_i32_1 = arith.constant 0 : i32
    return %arg0, %c0_i32, %arg1, %c0_i32_0 : i32, i32, i32, i32
  }
}

</mosaic_0001>

<bundles_post_ra>
// kernel: tpu_custom_call.1
= control target key start
LH: loop header
LB: loop body
LE: loop exit
PB: predicated region body
PF: predicated region fallthrough
CT: control target
= control target key end

     0   :  { %11 = vsyncpa [#allocation3], 0  ;;  %s3319_s0 = inlined_call_operand.hbm [shape: f32[2,4,64,128], index: 0, kind: input, shape index: {}]   ;;  %s3320_s1 = inlined_call_operand.vmem [shape: f32[2,64,1], index: 1, kind: input, shape index: {}]   ;;  %s3321_s2 = inlined_call_operand.vmem [shape: f32[2,64,1], index: 2, kind: input, shape index: {}]   ;;  %s3322_s3 = inlined_call_operand.vmem [shape: f32[1,128], index: 3, kind: input, shape index: {}]   ;;  %s3323_s4 = inlined_call_operand.vmem [shape: f32[1,128], index: 4, kind: input, shape index: {}]   ;;  %s3324_s5 = inlined_call_operand.vmem [shape: f32[128,128], index: 5, kind: input, shape index: {}]   ;;  %s3325_s6 = inlined_call_operand.hbm [shape: f32[2,4,64,128], index: 6, kind: output, shape index: {}]  }
   0x1   :  { %13 = vsyncpa [#allocation3 + $0x1], 0 }
   0x2   :  { %14 = vsyncpa [#allocation4], 0 }
   0x3   :  { %16 = vsyncpa [#allocation4 + $0x1], 0  ;;  %s2372_s21 = smov 0   ;;  %s2374_s22 = smov 0  }
   0x4   :  { %s2376_s23 = smov 0   ;;  %s2378_s24 = smov 0  }
   0x5   :  { %s2380_s25 = smov 0   ;;  %s2382_s26 = smov 0  }
   0x6   :  { %s2384_s27 = smov 0   ;;  %s2386_s28 = smov 0  }
   0x7 LB: > { %3338 = sst [smem:[#allocation13_spill]] %s2295_s23  ;;  %s2021_s29 = sadd.s32 4294967295, %s2315_s28   ;;  %s2315_s28 = sphi %s2386_s28, %s22_s28   ;;  %s2311_s27 = sphi %s2384_s27, %s3379_s27   ;;  %s2307_s26 = sphi %s2382_s26, %s3378_s26   ;;  %s2303_s25 = sphi %s2380_s25, %s3377_s25   ;;  %s2299_s24 = sphi %s2378_s24, %s3376_s24   ;;  %s2295_s23 = sphi %s2376_s23, %s3375_s23   ;;  %s2291_s22 = sphi %s2374_s22, %s3381_s22   ;;  %s2287_s21 = sphi %s2372_s21, %s3380_s21  }
   0x8   : > { %3339 = sst [smem:[#allocation14_spill]] %s2307_s26  ;;  %s2022_s30 = sadd.s32 4294967294, %s2315_s28  }
   0x9   : > { %3340 = sst [smem:[#allocation15_spill]] %s2311_s27  ;;  %s31_s7 = sadd.s32 1, %s2307_s26 }
   0xa   : > { %p32_p0 = scmp.ge.s32.totalorder %s31_s7, 2  ;;  %s34_s8 = sadd.s32 1, %s2311_s27 }
   0xb   : > { %p50_p1 = scmp.ne.s32.totalorder %s2295_s23, %s2291_s22  ;;  %p51_p2 = scmp.eq.s32.totalorder %s2315_s28, 0 }
   0xc   : > { %s3383_s7 = smov (%p32_p0, %s31_s7), 0  ;;  %s3385_s8 = smov (!%p32_p0, %s34_s8), %s2311_s27 }
   0xd   : > { %3341 = sst [smem:[#allocation16_spill]] %s3383_s7  ;;  %s39_s9 = ssub.s32 %s2307_s26, %s3383_s7 }
   0xe   : > { %p2424_p3 = por %p51_p2, %p50_p1  ;;  %p36_p4 = scmp.ge.s32.totalorder %s3385_s8, 2 }
   0xf   : > { %p56_p5 = scmp.ne.s32.totalorder %s2291_s22, %s2287_s21  ;;  %p57_p6 = scmp.eq.s32.totalorder %s2021_s29, 0 }
  0x10   : > { %p201_p7 = scmp.eq.s32.totalorder %s2021_s29, 3  ;;  %s3387_s8 = smov (%p36_p4, %s3385_s8), 0 }
  0x11   : > { %3343 = sst [smem:[#allocation17_spill]] %s3387_s8  ;;  %p2432_p8 = por %p57_p6, %p56_p5 }
  0x12   : > { %p2436_p9 = por %p201_p7, %p50_p1  ;;  %s38_s13 = ssub.s32 %s2311_s27, %s3387_s8 }
  0x13   : > { %p207_p10 = scmp.eq.s32.totalorder %s2022_s30, 3  ;;  %s40_s14 = sor.u32 %s39_s9, %s38_s13 }
  0x14   : > { %s43_s15 = sadd.s32 1, %s2295_s23  ;;  %p41_p11 = scmp.eq.s32.totalorder %s40_s14, 0 }
  0x15   : > { %p2443_p12 = por %p207_p10, %p56_p5  ;;  %p2024_p13 = scmp.ge.s32.totalorder %s2315_s28, 4 }
  0x16   : > { %s2448_s17 = scalar_select %p41_p11, %s2295_s23, %s43_s15  }
  0x17   : > { %232 = sbr.rel (%p2024_p13) target bundleno = 44 (0x2c), region = 28 }
  0x18   : > { %3347 = sst [smem:[#allocation18_spill]] %s2448_s17 }
  0x1c   : > { %s236_s18 = sand.u32 1, %s2295_s23   ;;  %s2026_s19 = sshll.u32 %s2307_s26, 2 }
  0x1d   : > { %s2025_s20 = sshll.u32 %s236_s18, 7  ;;  %s2027_s29 = sshll.u32 %s2311_s27, 5 }
  0x1e   : > { %s245_s30 = sadd.s32 %s2027_s29, %s2026_s19  ;;  %s240_s13 = scalar_lea.vmem [#allocation2], %s2025_s20 }
  0x1f   : > { %s2028_s9 = sshll.u32 %s245_s30, 3  ;;  %s262_s14 = sshll.u32 %s240_s13, 4  ;;  %s263_s14 = int_to_ptr.vmem [resolvable:$true] %s262_s14 }
  0x20   : > { %s247_s7 = scalar_lea.hbm %s3319_s0, %s2028_s9  ;;  %s2317_s23 = smov 1024  }
  0x21   : > { %s2118_s17 = scalar_select %p2424_p3, [#allocation0], [#allocation10] }
  0x22   : > { %2119 = sst [smem:[#allocation7]] (%p2424_p3), %s2317_s23  ;;  %s260_s27 = sshll.u32 %s247_s7, 4  ;;  %s261_s27 = int_to_ptr.hbm [resolvable:$true] %s260_s27 }
  0x23   : > { %s252_s26 = sld [smem:[%s2118_s17]]   ;;  %s2318_s19 = smov 512  }
  0x24   : > { %2120 = sst [smem:[#allocation7 + $0x1]] (%p2424_p3), %s2318_s19  ;;  %s2319_s20 = smov 4  }
  0x25   : > { %2121 = sst [smem:[#allocation7 + $0x2]] (%p2424_p3), %s2319_s20  ;;  %s2320_s29 = smov 128  }
  0x26   : > { %2122 = sst [smem:[#allocation7 + $0x3]] (%p2424_p3), %s2320_s29  ;;  %s2321_s30 = smov 8  }
  0x27   : > { %2123 = sst [smem:[#allocation7 + $0x4]] (%p2424_p3), %s2320_s29  ;;  %s237_s17 = scalar_lea.sflag [#allocation3], %s236_s18 }
  0x28   : > { %2124 = sst [smem:[#allocation7 + $0x5]] (%p2424_p3), %s2321_s30  ;;  %s2322_s9 = smov [#allocation6]  }
  0x29   : > { %s2029_s8 = sshll.u32 %s252_s26, 26 }
  0x2a   : > { %s2030_s23 = sadd.s32 134217728, %s2029_s8 }
  0x2b   : > { %2125 = dma.general (%p2424_p3), %s261_s27, 2048, %s263_s14, %s237_s17, %s2322_s9, [#allocation7], %s2030_s23, 0  }
  0x2c PF: > { %p2031_p0 = scmp.ge.s32.totalorder %s2315_s28, 1  ;;  %p309_p1 = scmp.lt.s32.totalorder %s2315_s28, 5 }
  0x2e   : > { %p310_p2 = pnand %p2031_p0, %p309_p1 }
  0x2f   : > { %s2476_s7 = sand.u32 (!%p310_p2), 1, %s2291_s22  }
  0x30   : > { %313 = sbr.rel (%p310_p2) target bundleno = 390 (0x186), region = 44  ;;  %s2032_s26 = sshll.u32 (!%p310_p2), %s2476_s7, 7 }
  0x31   : > { %s316_s13 = scalar_lea.sflag (!%p310_p2), [#allocation3], %s2476_s7  ;;  %s2482_s18 = scalar_lea.vmem (!%p310_p2), [#allocation2], %s2032_s26 }
  0x35   : > { %2278 = dma.done.wait (%p2432_p8), %s316_s13, 2048  }
  0x36   : > { %2280 = vsyncadd (%p2432_p8), %s316_s13, 4294965248  ;;  %s2489_s27 = sshll.u32 %s2299_s24, 2  ;;  %p369_p3 = scmp.lt.s32.totalorder %s2303_s25, 1  ;;  %v2323_v0 = vmov 0   ;;  %v1724_v1 = vld [vmem:[%s3324_s5 + $0x78] sm:$0xff]  ;;  %v1723_v2 = vld [vmem:[%s3324_s5 + $0x70] sm:$0xff] }
  0x37   : > { %2225 = vset.pattern.permute.xlu1 %v2323_v0  ;;  %2224 = vset.pattern.permute.xlu0 %v2323_v0  ;;  %p371_p4 = scmp.lt.s32.totalorder %s2489_s27, 7  ;;  %v1722_v5 = vld [vmem:[%s3324_s5 + $0x68] sm:$0xff]  ;;  %v1721_v7 = vld [vmem:[%s3324_s5 + $0x60] sm:$0xff]  ;;  %v1720_v8 = vld [vmem:[%s3324_s5 + $0x58] sm:$0xff] }
  0x38   : > { %s370_s10 = scalar_select %p369_p3, %s2303_s25, 1  ;;  %2226 = vset.pattern.permute.xlu2 %v2323_v0  ;;  %2071 = vmatpush.msra.mxu2 %v1724_v1  ;;  %v1719_v11 = vld [vmem:[%s3324_s5 + $0x50] sm:$0xff]  ;;  %v1718_v13 = vld [vmem:[%s3324_s5 + $0x48] sm:$0xff]  ;;  %v1717_v14 = vld [vmem:[%s3324_s5 + $0x40] sm:$0xff] }
  0x39   : > { %s372_s14 = scalar_select %p371_p4, %s2489_s27, 7  ;;  %2072 = vmatpush.msra.mxu3 %v1724_v1  ;;  %1725 = vmatpush.msra.mxu0 %v1724_v1  ;;  %v1716_v17 = vld [vmem:[%s3324_s5 + $0x38] sm:$0xff]  ;;  %v1715_v18 = vld [vmem:[%s3324_s5 + $0x30] sm:$0xff]  ;;  %v1714_v19 = vld [vmem:[%s3324_s5 + $0x28] sm:$0xff] }
  0x3a   : > { %s2035_s11 = sshll.u32 %s370_s10, 3  ;;  %2074 = vmatpush.msra.mxu2 %v1723_v2  ;;  %2070 = vmatpush.msra.mxu1 %v1724_v1  ;;  %v1713_v20 = vld [vmem:[%s3324_s5 + $0x20] sm:$0xff]  ;;  %v1712_v21 = vld [vmem:[%s3324_s5 + $0x18] sm:$0xff]  ;;  %v1711_v22 = vld [vmem:[%s3324_s5 + $0x10] sm:$0xff] }
  0x3b   : > { %s374_s15 = sadd.s32 %s2035_s11, %s372_s14  ;;  %2075 = vmatpush.msra.mxu3 %v1723_v2  ;;  %1726 = vmatpush.msra.mxu0 %v1723_v2  ;;  %v1710_v23 = vld [vmem:[%s3324_s5 + $0x8] sm:$0xff]  ;;  %v1709_v24 = vld [vmem:[%s3324_s5] sm:$0xff]  ;;  %v399_v33 = vld [vmem:[%s2482_s18 + $0x50] sm:$0xff] }
  0x3c   : > { %s2036_s19 = sshll.u32 %s374_s15, 3  ;;  %2077 = vmatpush.msra.mxu2 %v1722_v5  ;;  %2073 = vmatpush.msra.mxu1 %v1723_v2  ;;  %v397_v25 = vld [vmem:[%s2482_s18 + $0x40] sm:$0xff]  ;;  %v398_v29 = vld [vmem:[%s2482_s18 + $0x48] sm:$0xff]  ;;  %v403_v34 = vld [vmem:[%s2482_s18 + $0x70] sm:$0xff] }
  0x3d   : > { %s376_s24 = scalar_lea.vmem %s3320_s1, %s2036_s19  ;;  %s2510_s10 = scalar_lea.vmem %s3321_s2, %s2036_s19  ;;  %2078 = vmatpush.msra.mxu3 %v1722_v5  ;;  %1727 = vmatpush.msra.mxu0 %v1722_v5  ;;  %v401_v26 = vld [vmem:[%s2482_s18 + $0x60] sm:$0xff]  ;;  %v402_v30 = vld [vmem:[%s2482_s18 + $0x68] sm:$0xff]  ;;  %v391_v35 = vld [vmem:[%s2482_s18 + $0x10] sm:$0xff] }
  0x3e   : > { %v407_v3 = vld [vmem:[%s376_s24 + $0x10] sm:$0xff]  ;;  %v405_v4 = vld [vmem:[%s376_s24] sm:$0xff]  ;;  %v408_v9 = vld [vmem:[%s376_s24 + $0x18] sm:$0xff]  ;;  %2080 = vmatpush.msra.mxu2 %v1721_v7  ;;  %2076 = vmatpush.msra.mxu1 %v1722_v5  ;;  %v2325_v5 = vmov 2131351028   ;;  %s3192_s19 = scalar_lea.vmem [#allocation5], %s2032_s26 }
  0x3f   : > { %427 = vperm.xlu1 %2225, %v407_v3   ;;  %417 = vperm.xlu0 %2224, %v405_v4   ;;  %v409_v6 = vld [vmem:[%s2510_s10] sm:$0xff]  ;;  %v406_v10 = vld [vmem:[%s376_s24 + $0x8] sm:$0xff]  ;;  %v412_v15 = vld [vmem:[%s2510_s10 + $0x18] sm:$0xff]  ;;  %v2324_v3 = vmov 920167782   ;;  %s1855_s26 = scalar_lea.sflag [#allocation4], %s2476_s7 }
  0x40   : > { %444 = vperm.xlu2 %2226, %v409_v6   ;;  %2081 = vmatpush.msra.mxu3 %v1721_v7  ;;  %v410_v12 = vld [vmem:[%s2510_s10 + $0x8] sm:$0xff]  ;;  %v411_v16 = vld [vmem:[%s2510_s10 + $0x10] sm:$0xff]  ;;  %v389_v27 = vld [vmem:[%s2482_s18] sm:$0xff] }
  0x41   : > { %2083 = vmatpush.msra.mxu2 %v1720_v8  ;;  %1728 = vmatpush.msra.mxu0 %v1721_v7  ;;  %v393_v28 = vld [vmem:[%s2482_s18 + $0x20] sm:$0xff]  ;;  %v390_v31 = vld [vmem:[%s2482_s18 + $0x8] sm:$0xff]  ;;  %v395_v36 = vld [vmem:[%s2482_s18 + $0x30] sm:$0xff] }
  0x42   : > { %2084 = vmatpush.msra.mxu3 %v1720_v8  ;;  %2079 = vmatpush.msra.mxu1 %v1721_v7  ;;  %v394_v32 = vld [vmem:[%s2482_s18 + $0x28] sm:$0xff]  ;;  %v400_v37 = vld [vmem:[%s2482_s18 + $0x58] sm:$0xff]  ;;  %v2577_v42 = vld [vmem:[%s3323_s4] ss:$0 sm:$0xff]  ;;  %v2326_v7 = vmov 2102212464  }
  0x43   : > { %2086 = vmatpush.msra.mxu2 %v1719_v11  ;;  %1729 = vmatpush.msra.mxu0 %v1720_v8  ;;  %v404_v38 = vld [vmem:[%s2482_s18 + $0x78] sm:$0xff]  ;;  %v2582_v43 = vld [vmem:[%s3322_s3] ss:$0 sm:$0xff] }
  0x44   : > { %2087 = vmatpush.msra.mxu3 %v1719_v11  ;;  %2082 = vmatpush.msra.mxu1 %v1720_v8  ;;  %v392_v39 = vld [vmem:[%s2482_s18 + $0x18] sm:$0xff] }
  0x45   : > { %2089 = vmatpush.msra.mxu2 %v1718_v13  ;;  %1730 = vmatpush.msra.mxu0 %v1719_v11  ;;  %v396_v40 = vld [vmem:[%s2482_s18 + $0x38] sm:$0xff] }
  0x46   : > { %2090 = vmatpush.msra.mxu3 %v1718_v13  ;;  %2085 = vmatpush.msra.mxu1 %v1719_v11 }
  0x47   : > { %432 = vperm.xlu1 %2225, %v408_v9   ;;  %422 = vperm.xlu0 %2224, %v406_v10   ;;  %v2327_v10 = vmov 1326507024  }
  0x48   : > { %449 = vperm.xlu2 %2226, %v410_v12   ;;  %2092 = vmatpush.msra.mxu2 %v1717_v14 }
  0x49   : > { %2093 = vmatpush.msra.mxu3 %v1717_v14  ;;  %1731 = vmatpush.msra.mxu0 %v1718_v13 }
  0x4a   : > { %2095 = vmatpush.msra.mxu2 %v1716_v17  ;;  %2088 = vmatpush.msra.mxu1 %v1718_v13 }
  0x4b   : > { %2096 = vmatpush.msra.mxu3 %v1716_v17  ;;  %1732 = vmatpush.msra.mxu0 %v1717_v14 }
  0x4c   : > { %2098 = vmatpush.msra.mxu2 %v1715_v18  ;;  %2091 = vmatpush.msra.mxu1 %v1717_v14  ;;  %v2328_v14 = vmov 2475754826  }
  0x4d   : > { %2099 = vmatpush.msra.mxu3 %v1715_v18  ;;  %1733 = vmatpush.msra.mxu0 %v1716_v17 }
  0x4e   : > { %2101 = vmatpush.msra.mxu2 %v1714_v19  ;;  %2094 = vmatpush.msra.mxu1 %v1716_v17 }
  0x4f   : > { %459 = vperm.xlu1 %2225, %v412_v15   ;;  %454 = vperm.xlu0 %2224, %v411_v16  }
  0x50   : > { %2102 = vmatpush.msra.mxu3 %v1714_v19  ;;  %2104 = vmatpush.msra.mxu2 %v1713_v20 }
  0x51   : > { %1734 = vmatpush.msra.mxu0 %v1715_v18  ;;  %2097 = vmatpush.msra.mxu1 %v1715_v18 }
  0x52   : > { %2105 = vmatpush.msra.mxu3 %v1713_v20  ;;  %2107 = vmatpush.msra.mxu2 %v1712_v21 }
  0x53   : > { %1735 = vmatpush.msra.mxu0 %v1714_v19  ;;  %2100 = vmatpush.msra.mxu1 %v1714_v19 }
  0x54   : > { %2108 = vmatpush.msra.mxu3 %v1712_v21  ;;  %2110 = vmatpush.msra.mxu2 %v1711_v22 }
  0x55   : > { %1736 = vmatpush.msra.mxu0 %v1713_v20  ;;  %2103 = vmatpush.msra.mxu1 %v1713_v20 }
  0x56   : > { %2111 = vmatpush.msra.mxu3 %v1711_v22  ;;  %2113 = vmatpush.msra.mxu2 %v1710_v23 }
  0x57   : > { %1737 = vmatpush.msra.mxu0 %v1712_v21  ;;  %2106 = vmatpush.msra.mxu1 %v1712_v21 }
  0x58   : > { %2114 = vmatpush.msra.mxu3 %v1710_v23  ;;  %2116 = vmatpush.msra.mxu2 %v1709_v24 }
  0x59   : > { %1765 = vmatmul.f32.vlgmr.msra.gmra.mxu2 %v397_v25  ;;  %1738 = vmatpush.msra.mxu0 %v1711_v22 }
  0x5a   : > { %2117 = vmatpush.msra.mxu3 %v1709_v24  ;;  %2109 = vmatpush.msra.mxu1 %v1711_v22 }
  0x5b   : > { %1777 = vmatmul.f32.vlgmr.msra.gmra.mxu3 %v401_v26  ;;  %1739 = vmatpush.msra.mxu0 %v1710_v23 }
  0x5c   : > { %2112 = vmatpush.msra.mxu1 %v1710_v23 }
  0x5d   : > { %1740 = vmatpush.msra.mxu0 %v1709_v24 }
  0x5e   : > { %2115 = vmatpush.msra.mxu1 %v1709_v24  ;;  %1741 = vmatmul.f32.vlgmr.msra.gmra.mxu0 %v389_v27 }
  0x5f   : > { %1753 = vmatmul.f32.vlgmr.msra.gmra.mxu1 %v393_v28 }
  0x61   : > { %1768 = vmatmul.f32.gmra.mxu2 %v398_v29 }
  0x63   : > { %1780 = vmatmul.f32.gmra.mxu3 %v402_v30 }
  0x66   : > { %1744 = vmatmul.f32.gmra.mxu0 %v390_v31 }
  0x67   : > { %1756 = vmatmul.f32.gmra.mxu1 %v394_v32 }
  0x69   : > { %1771 = vmatmul.f32.gmra.mxu2 %v399_v33 }
  0x6b   : > { %1783 = vmatmul.f32.gmra.mxu3 %v403_v34 }
  0x6e   : > { %1747 = vmatmul.f32.gmra.mxu0 %v391_v35  ;;  %v3336_v35 = vmov 683565275  }
  0x6f   : > { %1759 = vmatmul.f32.gmra.mxu1 %v395_v36 }
  0x71   : > { %1774 = vmatmul.f32.gmra.mxu2 %v400_v37 }
  0x73   : > { %1786 = vmatmul.f32.gmra.mxu3 %v404_v38 }
  0x76   : > { %1750 = vmatmul.f32.gmra.mxu0 %v392_v39 }
  0x77   : > { %1762 = vmatmul.f32.gmra.mxu1 %v396_v40 }
  0x9a   : > { %v445_v41 = vpop.permute.xlu2 %444 }
  0x9b   : > { %v465_v44 = vmul.f32 %v2577_v42, %v445_v41 }
  0xa2   : > { %v450_v49 = vpop.permute.xlu2 %449 }
  0xa3   : > { %v466_v52 = vmul.f32 %v2577_v42, %v450_v49 }
  0xb1   : > { %v418_v45 = vpop.permute.xlu0 %417  ;;  %v428_v47 = vpop.permute.xlu1 %427 }
  0xb2   : > { %v438_v46 = vmul.f32 %v2582_v43, %v418_v45  ;;  %v440_v39 = vmul.f32 %v2582_v43, %v428_v47 }
  0xb4   : > { %v2586_v48 = vadd.f32 %v465_v44, %v438_v46 }
  0xb6   : > { %v476_v50 = vand.u32 2139095040, %v2586_v48  ;;  %v3334_v62 = vand.u32 2147483647, %v2586_v48 }
  0xb8   : > { %v477_v51 = vshrl.u32 %v476_v50, 23  ;;  %v480_v12 = vand.u32 8388607, %v3334_v62 }
  0xb9   : > { %v423_v53 = vpop.permute.xlu0 %422  ;;  %v433_v58 = vpop.permute.xlu1 %432 }
  0xba   : > { %v2040_v54 = vadd.s32 4294967169, %v477_v51  ;;  %v439_v55 = vmul.f32 %v2582_v43, %v423_v53  ;;  %v481_v24 = vor.u32 8388608, %v480_v12  ;;  %v441_v29 = vmul.f32 %v2582_v43, %v433_v58 }
  0xbc   : > { %v483_v56 = vadd.s32 1, %v2040_v54  ;;  %v2591_v57 = vadd.f32 %v466_v52, %v439_v55  ;;  %v2622_v32 = vshll.u32 %v481_v24, 8 }
  0xbe   : > { %vm484_vm0 = vcmp.gt.s32.totalorder %v483_v56, 0  ;;  %v630_v60 = vand.u32 2139095040, %v2591_v57  ;;  %v3333_v33 = vand.u32 2147483647, %v2591_v57  ;;  %v2635_v41 = vand.u32 65535, %v2622_v32 }
  0xbf   : > { %v485_v59 = vsel %vm484_vm0, %v483_v56, 0 }
  0xc0   : > { %v487_v61 = vand.u32 31, %v485_v59  ;;  %v631_v1 = vshrl.u32 %v630_v60, 23  ;;  %v2595_v2 = vshrl.u32 %v485_v59, 5  ;;  %v634_v46 = vand.u32 8388607, %v3333_v33 }
  0xc1   : > { %v460_v19 = vpop.permute.xlu1 %459 }
  0xc2   : > { %v488_v63 = vsub.s32 32, %v487_v61  ;;  %v502_v4 = vshll.u32 %v2324_v3, %v487_v61  ;;  %v2043_v13 = vadd.s32 4294967169, %v631_v1  ;;  %v493_v15 = vshll.u32 %v2328_v14, %v487_v61  ;;  %v455_v1 = vpop.permute.xlu0 %454 }
  0xc3   : > { %v496_v16 = vshll.u32 %v2325_v5, %v487_v61  ;;  %v499_v17 = vshll.u32 %v2326_v7, %v487_v61  ;;  %vm508_vm1 = vcmp.lt.s32.totalorder %v2595_v2, 4  ;;  %v468_v26 = vmul.f32 %v2577_v42, %v460_v19 }
  0xc4   : > { %v494_v6 = vshrl.u32 %v2325_v5, %v488_v63  ;;  %v497_v8 = vshrl.u32 %v2326_v7, %v488_v63  ;;  %v500_v9 = vshrl.u32 %v2324_v3, %v488_v63  ;;  %v503_v11 = vshrl.u32 %v2327_v10, %v488_v63 }
  0xc5   : > { %v637_v23 = vadd.s32 1, %v2043_v13  ;;  %vm505_vm3 = vcmp.lt.s32.totalorder %v2595_v2, 1  ;;  %vm507_vm4 = vcmp.lt.s32.totalorder %v2595_v2, 3  ;;  %v491_v31 = vshrl.u32 %v2328_v14, %v488_v63 }
  0xc6   : > { %v504_v18 = vor.u32 %v503_v11, %v502_v4  ;;  %v2608_v20 = vor.u32 %v494_v6, %v493_v15  ;;  %v498_v21 = vor.u32 %v497_v8, %v496_v16  ;;  %v501_v22 = vor.u32 %v500_v9, %v499_v17 }
  0xc7   : > { %vm638_vm2 = vcmp.gt.s32.totalorder %v637_v23, 0  ;;  %vm506_vm5 = vcmp.lt.s32.totalorder %v2595_v2, 2  ;;  %v2626_v34 = vadd.f32 %v468_v26, %v441_v29  ;;  %v490_v36 = vshll.u32 %v3336_v35, %v487_v61 }
  0xc8   : > { %v518_v25 = vsel %vm508_vm1, %v504_v18, 1326507024  ;;  %v517_v27 = vsel %vm505_vm3, %v2608_v20, %v498_v21  ;;  %v639_v30 = vsel %vm638_vm2, %v637_v23, 0  ;;  %v489_v58 = vshrl.u32 %v3336_v35, %v488_v63 }
  0xc9   : > { %v519_v28 = vsel %vm507_vm4, %v501_v22, %v518_v25  ;;  %v641_v38 = vand.u32 31, %v639_v30  ;;  %v492_v40 = vor.u32 %v491_v31, %v490_v36  ;;  %v2640_v49 = vshrl.u32 %v639_v30, 5 }
  0xca   : > { %v2631_v37 = vsel %vm506_vm5, %v517_v27, %v519_v28  ;;  %v938_v50 = vand.u32 2139095040, %v2626_v34  ;;  %v510_v59 = vsel %vm508_vm1, %v498_v21, 2102212464  ;;  %v514_v61 = vsel %vm508_vm1, %v501_v22, 920167782 }
  0xcb   : > { %v642_v44 = vsub.s32 32, %v641_v38  ;;  %v525_v45 = vshrl.u32 %v2631_v37, 16  ;;  %v647_v51 = vshll.u32 %v2328_v14, %v641_v38  ;;  %v650_v43 = vshll.u32 %v2325_v5, %v641_v38 }
  0xcc   : > { %v653_v47 = vshll.u32 %v2326_v7, %v641_v38  ;;  %v656_v55 = vshll.u32 %v2324_v3, %v641_v38  ;;  %v513_v60 = vsel %vm505_vm3, %v492_v40, %v2608_v20  ;;  %vm662_vm6 = vcmp.lt.s32.totalorder %v2640_v49, 4 }
  0xcd   : > { %v648_v52 = vshrl.u32 %v2325_v5, %v642_v44  ;;  %v651_v53 = vshrl.u32 %v2326_v7, %v642_v44  ;;  %v654_v54 = vshrl.u32 %v2324_v3, %v642_v44  ;;  %v657_v56 = vshrl.u32 %v2327_v10, %v642_v44 }
  0xce   : > { %v2662_v11 = vmul.u32 %v525_v45, %v2635_v41  ;;  %v645_v63 = vshrl.u32 %v2328_v14, %v642_v44  ;;  %v939_v12 = vshrl.u32 %v938_v50, 23  ;;  %v515_v13 = vsel %vm507_vm4, %v498_v21, %v514_v61 }
  0xcf   : > { %v649_v4 = vor.u32 %v648_v52, %v647_v51  ;;  %v652_v6 = vor.u32 %v651_v53, %v650_v43  ;;  %v655_v8 = vor.u32 %v654_v54, %v653_v47  ;;  %v658_v9 = vor.u32 %v657_v56, %v656_v55 }
  0xd0   : > { %v524_v15 = vand.u32 65535, %v2631_v37  ;;  %v467_v17 = vmul.f32 %v2577_v42, %v455_v1  ;;  %v644_v18 = vshll.u32 %v3336_v35, %v641_v38  ;;  %vm659_vm7 = vcmp.lt.s32.totalorder %v2640_v49, 1 }
  0xd1   : > { %v672_v16 = vsel %vm662_vm6, %v658_v9, 1326507024  ;;  %vm661_vm8 = vcmp.lt.s32.totalorder %v2640_v49, 3  ;;  %v2049_v19 = vadd.s32 4294967169, %v939_v12  ;;  %v509_v22 = vsel %vm505_vm3, %v489_v58, %v492_v40 }
  0xd2   : > { %v635_v23 = vor.u32 8388608, %v634_v46  ;;  %v671_v21 = vsel %vm659_vm7, %v649_v4, %v652_v6  ;;  %v673_v24 = vsel %vm661_vm8, %v655_v8, %v672_v16  ;;  %v511_v42 = vsel %vm507_vm4, %v2608_v20, %v510_v59 }
  0xd3   : > { %v516_v25 = vsel %vm506_vm5, %v513_v60, %v515_v13  ;;  %v530_v26 = vshll.u32 %v2662_v11, 16  ;;  %v646_v27 = vor.u32 %v645_v63, %v644_v18  ;;  %v523_v28 = vshrl.u32 %v2622_v32, 16 }
  0xd4   : > { %vm660_vm9 = vcmp.lt.s32.totalorder %v2640_v49, 2  ;;  %v945_v29 = vadd.s32 1, %v2049_v19  ;;  %v2689_v30 = vadd.f32 %v467_v17, %v440_v39  ;;  %v526_v31 = vmul.u32 %v524_v15, %v2635_v41 }
  0xd5   : > { %v643_v36 = vshrl.u32 %v3336_v35, %v642_v44  ;;  %v664_v20 = vsel %vm662_vm6, %v652_v6, 2102212464  ;;  %v674_v38 = vsel %vm660_vm9, %v671_v21, %v673_v24  ;;  %v2699_v40 = vsel %vm506_vm5, %v509_v22, %v511_v42 }
  0xd6   : > { %v546_v46 = vand.u32 65535, %v516_v25  ;;  %v668_v50 = vsel %vm662_vm6, %v655_v8, 920167782  ;;  %v2703_v39 = vshll.u32 %v635_v23, 8  ;;  %vm2705_vm10 = vc.u32 %v526_v31, %v530_v26 }
  0xd7   : > { %v663_v44 = vsel %vm659_vm7, %v643_v36, %v646_v27  ;;  %v3331_v52 = vand.u32 2147483647, %v2626_v34  ;;  %vm946_vm11 = vcmp.gt.s32.totalorder %v945_v29, 0  ;;  %v665_v2 = vsel %vm661_vm8, %v649_v4, %v664_v20 }
  0xd8   : > { %v679_v43 = vshrl.u32 %v674_v38, 16  ;;  %v947_v47 = vsel %vm946_vm11, %v945_v29, 0  ;;  %v784_v53 = vand.u32 2139095040, %v2689_v30  ;;  %v547_v54 = vshrl.u32 %v516_v25, 16 }
  0xd9   : > { %v667_v55 = vsel %vm659_vm7, %v646_v27, %v649_v4  ;;  %v669_v56 = vsel %vm661_vm8, %v652_v6, %v668_v50  ;;  %v949_v58 = vand.u32 31, %v947_v47  ;;  %v2719_v59 = vmul.u32 %v524_v15, %v523_v28 }
  0xda   : > { %v676_v61 = vand.u32 65535, %v2703_v39  ;;  %v677_v1 = vshrl.u32 %v2703_v39, 16  ;;  %v529_v8 = vmul.u32 %v525_v45, %v523_v28  ;;  %v535_v4 = vsel %vm2705_vm10, 1, %v2323_v0 }
  0xdb   : > { %v2732_v6 = vsel %vm660_vm9, %v663_v44, %v665_v2  ;;  %v2734_v9 = vsub.s32 32, %v949_v58  ;;  %v670_v63 = vsel %vm660_vm9, %v667_v55, %v669_v56  ;;  %v942_v13 = vand.u32 8388607, %v3331_v52 }
  0xdc   : > { %v2738_v12 = vmul.u32 %v679_v43, %v676_v61  ;;  %v785_v37 = vshrl.u32 %v784_v53, 23  ;;  %v2743_v45 = vmul.u32 %v546_v46, %v2635_v41  ;;  %v2746_v15 = vmul.u32 %v547_v54, %v2635_v41 }
  0xdd   : > { %v2748_v16 = vmul.u32 %v546_v46, %v523_v28  ;;  %v2750_v17 = vmul.u32 %v547_v54, %v523_v28  ;;  %v532_v18 = vshll.u32 %v2719_v59, 16  ;;  %v536_v49 = vadd.s32 %v530_v26, %v526_v31 }
  0xde   : > { %v678_v19 = vand.u32 65535, %v674_v38  ;;  %v965_v22 = vshrl.u32 %v2327_v10, %v2734_v9  ;;  %v2755_v23 = vadd.s32 %v535_v4, %v529_v8  ;;  %v700_v21 = vand.u32 65535, %v670_v63 }
  0xdf   : > { %v701_v24 = vshrl.u32 %v670_v63, 16  ;;  %v684_v41 = vshll.u32 %v2738_v12, 16  ;;  %v943_v25 = vor.u32 8388608, %v942_v13  ;;  %v964_v27 = vshll.u32 %v2324_v3, %v949_v58 }
  0xe0   : > { %v2046_v28 = vadd.s32 4294967169, %v785_v37  ;;  %v2761_v29 = vshrl.u32 %v947_v47, 5  ;;  %v956_v26 = vshrl.u32 %v2325_v5, %v2734_v9  ;;  %v959_v31 = vshrl.u32 %v2326_v7, %v2734_v9 }
  0xe1   : > { %v962_v36 = vshrl.u32 %v2324_v3, %v2734_v9  ;;  %v680_v20 = vmul.u32 %v678_v19, %v676_v61  ;;  %v2769_v38 = vmul.u32 %v678_v19, %v677_v1  ;;  %v955_v46 = vshll.u32 %v2328_v14, %v949_v58 }
  0xe2   : > { %v966_v50 = vor.u32 %v965_v22, %v964_v27  ;;  %v953_v51 = vshrl.u32 %v2328_v14, %v2734_v9  ;;  %v958_v44 = vshll.u32 %v2325_v5, %v949_v58  ;;  %v961_v2 = vshll.u32 %v2326_v7, %v949_v58 }
  0xe3   : > { %v791_v47 = vadd.s32 1, %v2046_v28  ;;  %v683_v53 = vmul.u32 %v679_v43, %v677_v1  ;;  %vm688_vm12 = vc.u32 %v680_v20, %v684_v41  ;;  %v952_v54 = vshll.u32 %v3336_v35, %v949_v58 }
  0xe4   : > { %v3332_v55 = vand.u32 2147483647, %v2689_v30  ;;  %v2778_v56 = vor.u32 %v956_v26, %v955_v46  ;;  %v2780_v8 = vor.u32 %v959_v31, %v958_v44  ;;  %v963_v4 = vor.u32 %v962_v36, %v961_v2 }
  0xe5   : > { %vm970_vm13 = vcmp.lt.s32.totalorder %v2761_v29, 4  ;;  %v2783_v63 = vmul.u32 %v700_v21, %v676_v61  ;;  %v2787_v37 = vshll.u32 %v943_v25, 8  ;;  %vm792_vm14 = vcmp.gt.s32.totalorder %v791_v47, 0 }
  0xe6   : > { %v980_v13 = vsel %vm970_vm13, %v966_v50, 1326507024  ;;  %v2789_v43 = vmul.u32 %v701_v24, %v676_v61  ;;  %v2791_v58 = vmul.u32 %v700_v21, %v677_v1  ;;  %v2793_v19 = vmul.u32 %v701_v24, %v677_v1 }
  0xe7   : > { %v2795_v22 = vor.u32 %v953_v51, %v952_v54  ;;  %v689_v27 = vsel %vm688_vm12, 1, %v2323_v0  ;;  %vm967_vm15 = vcmp.lt.s32.totalorder %v2761_v29, 1  ;;  %vm969_vm0 = vcmp.lt.s32.totalorder %v2761_v29, 3 }
  0xe8   : > { %v788_v28 = vand.u32 8388607, %v3332_v55  ;;  %v976_v25 = vsel %vm970_vm13, %v963_v4, 920167782  ;;  %v979_v61 = vsel %vm967_vm15, %v2778_v56, %v2780_v8  ;;  %v981_v1 = vsel %vm969_vm0, %v963_v4, %v980_v13 }
  0xe9   : > { %v793_v21 = vsel %vm792_vm14, %v791_v47, 0  ;;  %v686_v24 = vshll.u32 %v2769_v38, 16  ;;  %v2811_v26 = vadd.s32 %v684_v41, %v680_v20  ;;  %v2814_v31 = vand.u32 65535, %v2787_v37 }
  0xea   : > { %v795_v36 = vand.u32 31, %v793_v21  ;;  %v2816_v46 = vadd.s32 %v689_v27, %v683_v53  ;;  %vm968_vm1 = vcmp.lt.s32.totalorder %v2761_v29, 2  ;;  %v975_v50 = vsel %vm967_vm15, %v2795_v22, %v2778_v56 }
  0xeb   : > { %v2824_v51 = vshrl.u32 %v2787_v37, 16  ;;  %v977_v41 = vsel %vm969_vm0, %v2780_v8, %v976_v25  ;;  %v2831_v20 = vsel %vm968_vm1, %v979_v61, %v981_v1  ;;  %v789_v44 = vor.u32 8388608, %v788_v28 }
  0xec   : > { %v2833_v2 = vsub.s32 32, %v795_v36  ;;  %v2835_v47 = vshrl.u32 %v793_v21, 5  ;;  %v798_v53 = vshll.u32 %v3336_v35, %v795_v36  ;;  %v801_v54 = vshll.u32 %v2328_v14, %v795_v36 }
  0xed   : > { %vm538_vm2 = vc.u32 %v536_v49, %v532_v18  ;;  %v804_v27 = vshll.u32 %v2325_v5, %v795_v36  ;;  %v807_v25 = vshll.u32 %v2326_v7, %v795_v36  ;;  %v810_v1 = vshll.u32 %v2324_v3, %v795_v36 }
  0xee   : > { %v799_v4 = vshrl.u32 %v2328_v14, %v2833_v2  ;;  %v802_v13 = vshrl.u32 %v2325_v5, %v2833_v2  ;;  %v805_v28 = vshrl.u32 %v2326_v7, %v2833_v2  ;;  %v808_v61 = vshrl.u32 %v2324_v3, %v2833_v2 }
  0xef   : > { %v811_v18 = vshrl.u32 %v2327_v10, %v2833_v2  ;;  %v539_v5 = vsel %vm538_vm2, 1, %v2323_v0  ;;  %vm813_vm3 = vcmp.lt.s32.totalorder %v2835_v47, 1  ;;  %v2862_v7 = vshll.u32 %v789_v44, 8 }
  0xf0   : > { %v2854_v49 = vor.u32 %v799_v4, %v798_v53  ;;  %v2856_v14 = vor.u32 %v802_v13, %v801_v54  ;;  %v2858_v21 = vor.u32 %v805_v28, %v804_v27  ;;  %v809_v52 = vor.u32 %v808_v61, %v807_v25 }
  0xf1   : > { %v812_v55 = vor.u32 %v811_v18, %v810_v1  ;;  %vm816_vm4 = vcmp.lt.s32.totalorder %v2835_v47, 4  ;;  %v552_v36 = vshll.u32 %v2746_v15, 16  ;;  %vm815_vm5 = vcmp.lt.s32.totalorder %v2835_v47, 3 }
  0xf2   : > { %v821_v3 = vsel %vm813_vm3, %v2854_v49, %v2856_v14  ;;  %v825_v10 = vsel %vm813_vm3, %v2856_v14, %v2858_v21  ;;  %v822_v44 = vsel %vm816_vm4, %v809_v52, 920167782  ;;  %v541_v54 = vadd.s32 %v539_v5, %v2755_v23 }
  0xf3   : > { %v826_v53 = vsel %vm816_vm4, %v812_v55, 1326507024  ;;  %v2882_v4 = vsel %vm968_vm1, %v975_v50, %v977_v41  ;;  %vm814_vm6 = vcmp.lt.s32.totalorder %v2835_v47, 2  ;;  %v823_v13 = vsel %vm815_vm5, %v2858_v21, %v822_v44 }
  0xf4   : > { %v827_v27 = vsel %vm815_vm5, %v809_v52, %v826_v53  ;;  %v3335_v28 = vshrl.u32 %v2831_v20, 16  ;;  %v824_v55 = vsel %vm814_vm6, %v821_v3, %v823_v13  ;;  %v531_v50 = vshrl.u32 %v2662_v11, 16 }
  0xf5   : > { %v828_v23 = vsel %vm814_vm6, %v825_v10, %v827_v27  ;;  %v830_v25 = vand.u32 65535, %v2862_v7  ;;  %vm556_vm7 = vc.u32 %v2743_v45, %v552_v36  ;;  %v558_v52 = vadd.s32 %v552_v36, %v2743_v45 }
  0xf6   : > { %v832_v61 = vand.u32 65535, %v828_v23  ;;  %v833_v1 = vshrl.u32 %v828_v23, 16  ;;  %v542_v5 = vadd.s32 %v541_v54, %v531_v50  ;;  %v831_v3 = vshrl.u32 %v2862_v7, 16 }
  0xf7   : > { %v854_v10 = vand.u32 65535, %v824_v55  ;;  %v554_v11 = vshll.u32 %v2748_v16, 16  ;;  %v2908_v53 = vmul.u32 %v3335_v28, %v2814_v31  ;;  %v855_v27 = vshrl.u32 %v824_v55, 16 }
  0xf8   : > { %v2902_v44 = vmul.u32 %v833_v1, %v830_v25  ;;  %v533_v54 = vshrl.u32 %v2719_v59, 16  ;;  %v2912_v23 = vmul.u32 %v832_v61, %v831_v3  ;;  %v557_v36 = vsel %vm556_vm7, 1, %v2323_v0 }
  0xf9   : > { %vm560_vm8 = vc.u32 %v558_v52, %v554_v11  ;;  %v553_v33 = vshrl.u32 %v2746_v15, 16  ;;  %v559_v62 = vadd.s32 %v557_v36, %v2750_v17  ;;  %v834_v18 = vmul.u32 %v832_v61, %v830_v25 }
  0xfa   : > { %v838_v45 = vshll.u32 %v2902_v44, 16  ;;  %v2916_v50 = vadd.s32 %v542_v5, %v533_v54  ;;  %v561_v28 = vsel %vm560_vm8, 1, %v2323_v0  ;;  %v837_v42 = vmul.u32 %v833_v1, %v831_v3 }
  0xfb   : > { %v856_v55 = vmul.u32 %v854_v10, %v830_v25  ;;  %v555_v59 = vshrl.u32 %v2748_v16, 16  ;;  %v2922_v35 = vmul.u32 %v855_v27, %v830_v25  ;;  %v2924_v13 = vmul.u32 %v854_v10, %v831_v3 }
  0xfc   : > { %v859_v41 = vmul.u32 %v855_v27, %v831_v3  ;;  %v563_v60 = vadd.s32 %v561_v28, %v559_v62  ;;  %v840_v5 = vshll.u32 %v2912_v23, 16  ;;  %vm842_vm9 = vc.u32 %v834_v18, %v838_v45 }
  0xfd   : > { %vm692_vm10 = vc.u32 %v2811_v26, %v686_v24  ;;  %v706_v15 = vshll.u32 %v2789_v43, 16  ;;  %v2931_v17 = vadd.s32 %v558_v52, %v554_v11  ;;  %v685_v16 = vshrl.u32 %v2738_v12, 16 }
  0xfe   : > { %v564_v61 = vadd.s32 %v563_v60, %v553_v33  ;;  %v693_v25 = vsel %vm692_vm10, 1, %v2323_v0  ;;  %v708_v62 = vshll.u32 %v2791_v58, 16  ;;  %v843_v3 = vsel %vm842_vm9, 1, %v2323_v0 }
  0xff   : > { %v695_v1 = vadd.s32 %v693_v25, %v2816_v46  ;;  %vm710_vm11 = vc.u32 %v2783_v63, %v706_v15  ;;  %v712_v28 = vadd.s32 %v706_v15, %v2783_v63  ;;  %v844_v24 = vadd.s32 %v838_v45, %v834_v18 }
 0x100   : > { %v565_v26 = vadd.s32 %v564_v61, %v555_v59  ;;  %v711_v52 = vsel %vm710_vm11, 1, %v2323_v0  ;;  %vm568_vm12 = vc.u32 %v2916_v50, %v2931_v17  ;;  %v687_v46 = vshrl.u32 %v2769_v38, 16 }
 0x101   : > { %v696_v33 = vadd.s32 %v695_v1, %v685_v16  ;;  %v713_v60 = vadd.s32 %v711_v52, %v2793_v19  ;;  %vm714_vm14 = vc.u32 %v712_v28, %v708_v62  ;;  %v860_v63 = vshll.u32 %v2922_v35, 16 }
 0x102   : > { %v569_v12 = vadd.s32 1, %v565_v26  ;;  %v715_v10 = vsel %vm714_vm14, 1, %v2323_v0  ;;  %v845_v11 = vadd.s32 %v843_v3, %v837_v42  ;;  %v707_v18 = vshrl.u32 %v2789_v43, 16 }
 0x103   : > { %v709_v27 = vshrl.u32 %v2791_v58, 16  ;;  %v717_v54 = vadd.s32 %v715_v10, %v713_v60  ;;  %v2949_v36 = vadd.s32 %v696_v33, %v687_v46  ;;  %vm846_vm2 = vc.u32 %v844_v24, %v840_v5 }
 0x104   : > { %v570_v45 = vsel %vm568_vm12, %v569_v12, %v565_v26  ;;  %vm864_vm7 = vc.u32 %v856_v55, %v860_v63  ;;  %v3350_v19 = vmul.u32 %v2622_v32, %v2699_v40  ;;  %v2954_v38 = vadd.s32 %v712_v28, %v708_v62 }
 0x105   : > { %v718_v15 = vadd.s32 %v717_v54, %v707_v18  ;;  %v839_v61 = vshrl.u32 %v2902_v44, 16  ;;  %v847_v42 = vsel %vm846_vm2, 1, %v2323_v0  ;;  %v862_v43 = vshll.u32 %v2924_v13, 16 }
 0x106   : > { %v571_v59 = vadd.s32 %v570_v45, %v3350_v19  ;;  %v865_v58 = vsel %vm864_vm7, 1, %v2323_v0  ;;  %v866_v16 = vadd.s32 %v860_v63, %v856_v55  ;;  %v849_v5 = vadd.s32 %v847_v42, %v845_v11 }
 0x107   : > { %v719_v1 = vadd.s32 %v718_v15, %v709_v27  ;;  %v867_v3 = vadd.s32 %v865_v58, %v859_v41  ;;  %v3351_v32 = vand.u32 65535, %v2831_v20  ;;  %v992_v62 = vshll.u32 %v2908_v53, 16 }
 0x108   : > { %v572_v25 = vadd.s32 536870912, %v571_v59  ;;  %vm722_vm8 = vc.u32 %v2949_v36, %v2954_v38  ;;  %vm868_vm9 = vc.u32 %v866_v16, %v862_v43  ;;  %v850_v24 = vadd.s32 %v849_v5, %v839_v61 }
 0x109   : > { %v988_v40 = vmul.u32 %v3351_v32, %v2814_v31  ;;  %v723_v28 = vadd.s32 1, %v719_v1  ;;  %v869_v55 = vsel %vm868_vm9, 1, %v2323_v0  ;;  %v3352_v26 = vshrl.u32 %v2882_v4, 16 }
 0x10a   : > { %v2966_v44 = vshrl.u32 %v572_v25, 30  ;;  %v841_v52 = vshrl.u32 %v2912_v23, 16  ;;  %v861_v33 = vshrl.u32 %v2922_v35, 16  ;;  %v871_v60 = vadd.s32 %v869_v55, %v867_v3 }
 0x10b   : > { %v2972_v41 = vmul.u32 %v3352_v26, %v2814_v31  ;;  %v3353_v12 = vmov 683565275   ;;  %v818_v10 = vsel %vm816_vm4, %v2858_v21, 2102212464  ;;  %v724_v11 = vsel %vm722_vm8, %v723_v28, %v719_v1 }
 0x10c   : > { %v797_v46 = vshrl.u32 %v3353_v12, %v2833_v2  ;;  %v574_v63 = vshll.u32 %v2966_v44, 30  ;;  %v3354_v18 = vmul.u32 %v2703_v39, %v2732_v6  ;;  %v2985_v54 = vadd.s32 %v850_v24, %v841_v52 }
 0x10d   : > { %v863_v23 = vshrl.u32 %v2924_v13, 16  ;;  %v872_v35 = vadd.s32 %v871_v60, %v861_v33  ;;  %v3355_v45 = vmov %v3351_v32  ;;  %vm2993_vm10 = vc.u32 %v988_v40, %v992_v62 }
 0x10e   : > { %v725_v27 = vadd.s32 %v724_v11, %v3354_v18  ;;  %v2991_v2 = vmul.u32 %v3355_v45, %v2824_v51  ;;  %v817_v21 = vsel %vm813_vm3, %v797_v46, %v2854_v49  ;;  %v575_v39 = vsub.s32 %v571_v59, %v574_v63 }
 0x10f   : > { %v819_v6 = vsel %vm815_vm5, %v2856_v14, %v818_v10  ;;  %v3003_v15 = vadd.s32 %v866_v16, %v862_v43  ;;  %v873_v61 = vadd.s32 %v872_v35, %v863_v23  ;;  %v998_v42 = vadd.s32 %v992_v62, %v988_v40 }
 0x110   : > { %v726_v13 = vadd.s32 536870912, %v725_v27  ;;  %vm576_vm4 = vcmp.lt.s32.totalorder %v575_v39, 0  ;;  %v577_v58 = vsub.s32 0, %v575_v39  ;;  %v1014_v25 = vshll.u32 %v2972_v41, 16 }
 0x111   : > { %vm876_vm11 = vc.u32 %v2985_v54, %v3003_v15  ;;  %v877_v49 = vadd.s32 1, %v873_v61  ;;  %v994_v59 = vshll.u32 %v2991_v2, 16  ;;  %v3358_v14 = vand.u32 65535, %v2882_v4 }
 0x112   : > { %v3006_v1 = vshrl.u32 %v726_v13, 30  ;;  %v820_v43 = vsel %vm814_vm6, %v817_v21, %v819_v6  ;;  %v578_v16 = vsel %vm576_vm4, %v577_v58, %v575_v39  ;;  %v951_v3 = vshrl.u32 %v3353_v12, %v2734_v9 }
 0x113   : > { %v1010_v5 = vmul.u32 %v3358_v14, %v2814_v31  ;;  %v997_v32 = vsel %vm2993_vm10, 1, %v2323_v0  ;;  %v579_v40 = vclz %v578_v16  ;;  %v3359_v28 = vshrl.u32 %v2831_v20, 16 }
 0x114   : > { %v728_v62 = vshll.u32 %v3006_v1, 30  ;;  %v878_v55 = vsel %vm876_vm11, %v877_v49, %v873_v61  ;;  %vm1000_vm3 = vc.u32 %v998_v42, %v994_v59  ;;  %v971_v31 = vsel %vm967_vm15, %v951_v3, %v2795_v22 }
 0x115   : > { %v991_v24 = vmul.u32 %v3359_v28, %v2824_v51  ;;  %vm1018_vm5 = vc.u32 %v1010_v5, %v1014_v25  ;;  %v972_v9 = vsel %vm970_vm13, %v2780_v8, 2102212464  ;;  %v874_v47 = vmul.u32 %v2862_v7, %v820_v43 }
 0x116   : > { %v2041_v26 = vadd.s32 4294967294, %v579_v40  ;;  %v3360_v33 = vmov %v3358_v14  ;;  %v3361_v60 = vshrl.u32 %v2882_v4, 16  ;;  %v729_v46 = vsub.s32 %v725_v27, %v728_v62 }
 0x117   : > { %v999_v52 = vadd.s32 %v997_v32, %v991_v24  ;;  %v3035_v20 = vmul.u32 %v3360_v33, %v2824_v51  ;;  %vm475_vm15 = vcmp.lt.s32.totalorder %v2586_v48, 0  ;;  %v879_v22 = vadd.s32 %v878_v55, %v874_v47 }
 0x118   : > { %v1013_v12 = vmul.u32 %v3361_v60, %v2824_v51  ;;  %vm2042_vm6 = vcmp.lt.s32.totalorder %v2041_v26, 0  ;;  %v1001_v8 = vsel %vm1000_vm3, 1, %v2323_v0  ;;  %v1019_v7 = vsel %vm1018_vm5, 1, %v2323_v0 }
 0x119   : > { %v582_v10 = vsel %vm2042_vm6, 0, %v2041_v26  ;;  %vm730_vm13 = vcmp.lt.s32.totalorder %v729_v46, 0  ;;  %v731_v63 = vsub.s32 0, %v729_v46  ;;  %v1020_v11 = vadd.s32 %v1014_v25, %v1010_v5 }
 0x11a   : > { %v973_v18 = vsel %vm969_vm0, %v2778_v56, %v972_v9  ;;  %v567_v51 = vadd.s32 %v2931_v17, %v2916_v50  ;;  %v583_v4 = vsub.s32 32, %v582_v10  ;;  %v587_v27 = vsub.s32 4294967266, %v582_v10 }
 0x11b   : > { %v732_v23 = vsel %vm730_vm13, %v731_v63, %v729_v46  ;;  %v1003_v35 = vadd.s32 %v1001_v8, %v999_v52  ;;  %v1016_v45 = vshll.u32 %v3035_v20, 16  ;;  %v1021_v19 = vadd.s32 %v1019_v7, %v1013_v12 }
 0x11c   : > { %v3362_v21 = vand.u32 2147483647, %v2586_v48  ;;  %v584_v13 = vshll.u32 %v575_v39, %v582_v10  ;;  %v585_v61 = vshrl.u32 %v567_v51, %v583_v4  ;;  %v588_v42 = vadd.s32 127, %v587_v27 }
 0x11d   : > { %v733_v56 = vclz %v732_v23  ;;  %v597_v58 = vsub.s32 4, %v2966_v44  ;;  %v880_v50 = vadd.s32 536870912, %v879_v22  ;;  %v993_v17 = vshrl.u32 %v2908_v53, 16 }
 0x11e   : > { %vm3051_vm12 = vcmp.le.f32.partialorder %v3362_v21, 0.7853982  ;;  %vm1022_vm0 = vc.u32 %v1020_v11, %v1016_v45  ;;  %v3059_v25 = vsel %vm968_vm1, %v971_v31, %v973_v18  ;;  %v586_v49 = vor.u32 %v585_v61, %v584_v13 }
 0x11f   : > { %v589_v59 = vshll.u32 %v588_v42, 23  ;;  %v2044_v14 = vadd.s32 4294967294, %v733_v56  ;;  %v721_v5 = vadd.s32 %v2954_v38, %v2949_v36  ;;  %v3063_v39 = vshrl.u32 %v880_v50, 30 }
 0x120   : > { %v1004_v43 = vadd.s32 %v1003_v35, %v993_v17  ;;  %v1023_v16 = vsel %vm1022_vm0, 1, %v2323_v0  ;;  %v995_v53 = vshrl.u32 %v2991_v2, 16  ;;  %v598_v29 = vsel %vm475_vm15, %v597_v58, %v2966_v44 }
 0x121   : > { %v590_v3 = vor.u32 4788187, %v589_v59  ;;  %vm2045_vm14 = vcmp.lt.s32.totalorder %v2044_v14, 0  ;;  %v1025_v32 = vadd.s32 %v1023_v16, %v1021_v19  ;;  %v882_v62 = vshll.u32 %v3063_v39, 30 }
 0x122   : > { %v736_v40 = vsel %vm2045_vm14, 0, %v2044_v14  ;;  %v1015_v28 = vshrl.u32 %v2972_v41, 16  ;;  %v593_v38 = vcvt.s32.f32 %v586_v49  ;;  %v3074_v0 = vadd.s32 %v1004_v43, %v995_v53 }
 0x123   : > { %v591_v36 = vand.u32 2147483647, %v590_v3  ;;  %v737_v24 = vsub.s32 32, %v736_v40  ;;  %v741_v55 = vsub.s32 4294967266, %v736_v40  ;;  %v3072_v31 = vsub.s32 %v879_v22, %v882_v62 }
 0x124   : > { %v1017_v2 = vshrl.u32 %v3035_v20, 16  ;;  %v1026_v9 = vadd.s32 %v1025_v32, %v1015_v28  ;;  %v738_v26 = vshll.u32 %v729_v46, %v736_v40  ;;  %v600_v33 = vsel %vm3051_vm12, 0, %v598_v29 }
 0x125   : > { %v594_v47 = vmul.f32 %v593_v38, %v591_v36  ;;  %v739_v52 = vshrl.u32 %v721_v5, %v737_v24  ;;  %v742_v44 = vadd.s32 127, %v741_v55  ;;  %vm884_vm1 = vcmp.lt.s32.totalorder %v3072_v31, 0 }
 0x126   : > { %v885_v41 = vsub.s32 0, %v3072_v31  ;;  %v3081_v60 = vadd.s32 %v1020_v11, %v1016_v45  ;;  %v1027_v7 = vadd.s32 %v1026_v9, %v1017_v2  ;;  %vm629_vm2 = vcmp.lt.s32.totalorder %v2591_v57, 0 }
 0x127   : > { %v595_v12 = vxor.u32 2147483648, %v594_v47  ;;  %v740_v22 = vor.u32 %v739_v52, %v738_v26  ;;  %v743_v8 = vshll.u32 %v742_v44, 23  ;;  %v751_v20 = vsub.s32 4, %v3006_v1 }
 0x128   : > { %v886_v46 = vsel %vm884_vm1, %v885_v41, %v3072_v31  ;;  %vm1030_vm7 = vc.u32 %v3074_v0, %v3081_v60  ;;  %v1028_v11 = vmul.u32 %v2787_v37, %v3059_v25  ;;  %v1233_v4 = vadd.s32 3, %v600_v33 }
 0x129   : > { %v596_v10 = vsel %vm475_vm15, %v595_v12, %v594_v47  ;;  %v744_v63 = vor.u32 4788187, %v743_v8  ;;  %v887_v18 = vclz %v886_v46  ;;  %v1031_v27 = vadd.s32 1, %v1027_v7 }
 0x12a   : > { %v3095_v51 = vsel %vm3051_vm12, %v2586_v48, %v596_v10  ;;  %v747_v45 = vcvt.s32.f32 %v740_v22  ;;  %v3365_v21 = vand.u32 2147483647, %v2591_v57  ;;  %v752_v37 = vsel %vm629_vm2, %v751_v20, %v3006_v1 }
 0x12b   : > { %v601_v23 = vmul.f32 %v3095_v51, %v3095_v51  ;;  %v745_v35 = vand.u32 2147483647, %v744_v63  ;;  %v2047_v19 = vadd.s32 4294967294, %v887_v18  ;;  %v875_v6 = vadd.s32 %v3003_v15, %v2985_v54 }
 0x12c   : > { %vm3101_vm8 = vcmp.le.f32.partialorder %v3365_v21, 0.7853982  ;;  %v1032_v61 = vsel %vm1030_vm7, %v1031_v27, %v1027_v7  ;;  %vm783_vm9 = vcmp.lt.s32.totalorder %v2689_v30, 0  ;;  %v3111_v50 = vand.u32 3, %v600_v33 }
 0x12d   : > { %v602_v42 = vmul.f32 -0.001358992, %v601_v23  ;;  %v609_v56 = vmul.f32 -0.00019511016, %v601_v23  ;;  %v748_v58 = vmul.f32 %v747_v45, %v745_v35  ;;  %vm2048_vm10 = vcmp.lt.s32.totalorder %v2047_v19, 0 }
 0x12e   : > { %v3113_v17 = vand.u32 3, %v1233_v4  ;;  %v890_v25 = vsel %vm2048_vm10, 0, %v2047_v19  ;;  %v1033_v49 = vadd.s32 %v1032_v61, %v1028_v11  ;;  %v754_v54 = vsel %vm3101_vm8, 0, %v752_v37 }
 0x12f   : > { %v603_v59 = vadd.f32 0.041655596, %v602_v42  ;;  %v610_v14 = vadd.f32 0.008332121, %v609_v56  ;;  %v749_v5 = vxor.u32 2147483648, %v748_v58  ;;  %v891_v1 = vsub.s32 32, %v890_v25 }
 0x130   : > { %v895_v15 = vsub.s32 4294967266, %v890_v25  ;;  %v905_v43 = vsub.s32 4, %v3063_v39  ;;  %v1034_v16 = vadd.s32 536870912, %v1033_v49  ;;  %v3368_v62 = vand.u32 2147483647, %v2689_v30 }
 0x131   : > { %v604_v3 = vmul.f32 %v603_v59, %v601_v23  ;;  %v611_v53 = vmul.f32 %v610_v14, %v601_v23  ;;  %v750_v32 = vsel %vm629_vm2, %v749_v5, %v748_v58  ;;  %v893_v29 = vshrl.u32 %v875_v6, %v891_v1 }
 0x132   : > { %v3123_v40 = vsel %vm3101_vm8, %v2591_v57, %v750_v32  ;;  %vm3127_vm4 = vcmp.le.f32.partialorder %v3368_v62, 0.7853982  ;;  %v892_v36 = vshll.u32 %v3072_v31, %v890_v25  ;;  %v896_v38 = vadd.s32 127, %v895_v15 }
 0x133   : > { %v3132_v24 = vshrl.u32 %v1034_v16, 30  ;;  %v605_v55 = vadd.f32 -0.4999988, %v604_v3  ;;  %v612_v2 = vadd.f32 -0.16666654, %v611_v53  ;;  %vm622_vm11 = vcmp.eq.s32.totalorder %v3111_v50, 2  ;;  %v1742_v3 = vpop.f32.mrf.mxu0  ;;  %v1754_v53 = vpop.f32.mrf.mxu1 }
 0x134   : > { %v755_v9 = vmul.f32 %v3123_v40, %v3123_v40  ;;  %vm619_vm3 = vcmp.eq.s32.totalorder %v3111_v50, 0  ;;  %v3138_v47 = vand.u32 3, %v754_v54  ;;  %v894_v26 = vor.u32 %v893_v29, %v892_v36  ;;  %v2230_v36 = vld [vmem:[%s2482_s18 + $0x20] sm:$0xff] }
 0x135   : > { %v897_v52 = vshll.u32 %v896_v38, 23  ;;  %v1036_v44 = vshll.u32 %v3132_v24, 30  ;;  %v606_v33 = vmul.f32 %v605_v55, %v601_v23  ;;  %v613_v31 = vmul.f32 %v612_v2, %v601_v23  ;;  %v1778_v2 = vpop.f32.mrf.mxu3 }
 0x136   : > { %vm618_vm5 = vcmp.lt.s32.totalorder %v3111_v50, 2  ;;  %vm1235_vm15 = vcmp.lt.s32.totalorder %v3113_v17, 2  ;;  %v756_v41 = vmul.f32 -0.001358992, %v755_v9  ;;  %v763_v12 = vmul.f32 -0.00019511016, %v755_v9 }
 0x137   : > { %vm616_vm6 = vweird.f32 %v2586_v48  ;;  %v1388_v22 = vadd.s32 3, %v754_v54  ;;  %v898_v8 = vor.u32 4788187, %v897_v52  ;;  %v906_v7 = vsel %vm783_vm9, %v905_v43, %v3063_v39  ;;  %v1766_v48 = vpop.f32.mrf.mxu2 }
 0x138   : > { %v3147_v20 = vsub.s32 %v1033_v49, %v1036_v44  ;;  %v607_v46 = vadd.f32 1.0, %v606_v33  ;;  %v614_v10 = vadd.f32 1.0, %v613_v31  ;;  %v757_v63 = vadd.f32 0.041655596, %v756_v41  ;;  %v2232_v44 = vld [vmem:[%s2482_s18 + $0x60] sm:$0xff] }
 0x139   : > { %v764_v18 = vadd.f32 0.008332121, %v763_v12  ;;  %v899_v11 = vand.u32 2147483647, %v898_v8  ;;  %v901_v4 = vcvt.s32.f32 %v894_v26  ;;  %vm1236_vm12 = vcmp.eq.s32.totalorder %v3113_v17, 0 }
 0x13a   : > { %vm1038_vm13 = vcmp.lt.s32.totalorder %v3147_v20, 0  ;;  %v1039_v27 = vsub.s32 0, %v3147_v20  ;;  %v615_v23 = vmul.f32 %v614_v10, %v3095_v51  ;;  %v623_v35 = vxor.u32 2147483648, %v607_v46 }
 0x13b   : > { %v758_v45 = vmul.f32 %v757_v63, %v755_v9  ;;  %v765_v19 = vmul.f32 %v764_v18, %v755_v9  ;;  %vm1239_vm0 = vcmp.eq.s32.totalorder %v3113_v17, 2  ;;  %v902_v39 = vmul.f32 %v901_v4, %v899_v11  ;;  %v2229_v17 = vld [vmem:[%s2482_s18] sm:$0xff] }
 0x13c   : > { %v1040_v21 = vsel %vm1038_vm13, %v1039_v27, %v3147_v20  ;;  %v620_v13 = vxor.u32 2147483648, %v615_v23  ;;  %v3155_v6 = vand.u32 3, %v1388_v22  ;;  %v3159_v61 = vsel %vm3127_vm4, 0, %v906_v7 }
 0x13d   : > { %v759_v37 = vadd.f32 -0.4999988, %v758_v45  ;;  %v624_v51 = vsel %vm622_vm11, %v623_v35, %v615_v23  ;;  %v1241_v42 = vsel %vm1239_vm0, %v623_v35, %v615_v23  ;;  %v766_v56 = vadd.f32 -0.16666654, %v765_v19 }
 0x13e   : > { %v903_v58 = vxor.u32 2147483648, %v902_v39  ;;  %v621_v25 = vsel %vm619_vm3, %v607_v46, %v620_v13  ;;  %v1238_v49 = vsel %vm1236_vm12, %v607_v46, %v620_v13  ;;  %vm776_vm14 = vcmp.eq.s32.totalorder %v3138_v47, 2 }
 0x13f   : > { %v760_v59 = vmul.f32 %v759_v37, %v755_v9  ;;  %v1041_v14 = vclz %v1040_v21  ;;  %v625_v5 = vsel %vm618_vm5, %v621_v25, %v624_v51  ;;  %v1242_v1 = vsel %vm1235_vm15, %v1238_v49, %v1241_v42 }
 0x140   : > { %v767_v54 = vmul.f32 %v766_v56, %v755_v9  ;;  %v904_v15 = vsel %vm783_vm9, %v903_v58, %v902_v39  ;;  %v626_v43 = vsel %vm616_vm6, nan, %v625_v5  ;;  %v1243_v16 = vsel %vm616_vm6, nan, %v1242_v1  ;;  %v2231_v9 = vld [vmem:[%s2482_s18 + $0x40] sm:$0xff]  ;;  %v2233_v1 = vld [vmem:[%s2482_s18 + $0x8] sm:$0xff] }
 0x141   : > { %v761_v32 = vadd.f32 1.0, %v760_v59  ;;  %vm773_vm1 = vcmp.eq.s32.totalorder %v3138_v47, 0  ;;  %v3180_v50 = vsel %vm3127_vm4, %v2689_v30, %v904_v15  ;;  %v1790_v29 = vmul.f32 %v2229_v17, %v626_v43  ;;  %v1745_v59 = vpop.f32.mrf.mxu0  ;;  %v2234_v15 = vld [vmem:[%s2482_s18 + $0x28] sm:$0xff] }
 0x142   : > { %v1806_v62 = vmul.f32 %v1742_v3, %v1243_v16  ;;  %v1794_v38 = vmul.f32 %v2230_v36, %v626_v43  ;;  %v1810_v55 = vmul.f32 %v1754_v53, %v1243_v16  ;;  %vm772_vm2 = vcmp.lt.s32.totalorder %v3138_v47, 2  ;;  %v1781_v3 = vpop.f32.mrf.mxu3  ;;  %v2235_v53 = vld [vmem:[%s2482_s18 + $0x48] sm:$0xff] }
 0x143   : > { %v1798_v26 = vmul.f32 %v2231_v9, %v626_v43  ;;  %v1814_v52 = vmul.f32 %v1766_v48, %v1243_v16  ;;  %v1802_v33 = vmul.f32 %v2232_v44, %v626_v43  ;;  %v1818_v31 = vmul.f32 %v1778_v2, %v1243_v16  ;;  %v1769_v16 = vpop.f32.mrf.mxu2 }
 0x144   : > { %vm770_vm7 = vweird.f32 %v2591_v57  ;;  %v1822_v28 = vadd.f32 %v1806_v62, %v1790_v29  ;;  %v1826_v41 = vadd.f32 %v1810_v55, %v1794_v38  ;;  %v768_v12 = vadd.f32 1.0, %v767_v54  ;;  %v2236_v57 = vld [vmem:[%s2482_s18 + $0x68] sm:$0xff] }
 0x145   : > { %v777_v22 = vxor.u32 2147483648, %v761_v32  ;;  %v1830_v8 = vadd.f32 %v1814_v52, %v1798_v26  ;;  %v1834_v7 = vadd.f32 %v1818_v31, %v1802_v33  ;;  %v909_v46 = vmul.f32 %v3180_v50, %v3180_v50 }
 0x146   : > { %v2050_v10 = vadd.s32 4294967294, %v1041_v14  ;;  %1838 = vst [vmem:[%s3192_s19] sm:$0xff] %v1822_v28  ;;  %v769_v63 = vmul.f32 %v768_v12, %v3123_v40  ;;  %vm1390_vm8 = vcmp.lt.s32.totalorder %v3155_v6, 2  ;;  %vm1391_vm9 = vcmp.eq.s32.totalorder %v3155_v6, 0  ;;  %v1757_v14 = vpop.f32.mrf.mxu1 }
 0x147   : > { %vm1394_vm10 = vcmp.eq.s32.totalorder %v3155_v6, 2  ;;  %1842 = vst [vmem:[%s3192_s19 + $0x20] sm:$0xff] %v1826_v41  ;;  %v910_v18 = vmul.f32 -0.001358992, %v909_v46  ;;  %v917_v11 = vmul.f32 -0.00019511016, %v909_v46  ;;  %v1029_v4 = vadd.s32 %v3081_v60, %v3074_v0 }
 0x148   : > { %vm2051_vm4 = vcmp.lt.s32.totalorder %v2050_v10, 0  ;;  %1846 = vst [vmem:[%s3192_s19 + $0x40] sm:$0xff] %v1830_v8  ;;  %v774_v27 = vxor.u32 2147483648, %v769_v63  ;;  %v778_v23 = vsel %vm776_vm14, %v777_v22, %v769_v63  ;;  %v1543_v40 = vadd.s32 3, %v3159_v61 }
 0x149   : > { %v1044_v35 = vsel %vm2051_vm4, 0, %v2050_v10  ;;  %1850 = vst [vmem:[%s3192_s19 + $0x60] sm:$0xff] %v1834_v7  ;;  %v1396_v45 = vsel %vm1394_vm10, %v777_v22, %v769_v63  ;;  %v911_v19 = vadd.f32 0.041655596, %v910_v18  ;;  %v918_v39 = vadd.f32 0.008332121, %v917_v11 }
 0x14a   : > { %v1045_v21 = vsub.s32 32, %v1044_v35  ;;  %v775_v13 = vsel %vm773_vm1, %v761_v32, %v774_v27  ;;  %v1393_v0 = vsel %vm1391_vm9, %v761_v32, %v774_v27  ;;  %v1046_v60 = vshll.u32 %v3147_v20, %v1044_v35 }
 0x14b   : > { %v1049_v37 = vsub.s32 4294967266, %v1044_v35  ;;  %v779_v51 = vsel %vm772_vm2, %v775_v13, %v778_v23  ;;  %v1397_v42 = vsel %vm1390_vm8, %v1393_v0, %v1396_v45  ;;  %v912_v56 = vmul.f32 %v911_v19, %v909_v46  ;;  %v1748_v13 = vpop.f32.mrf.mxu0 }
 0x14c   : > { %v919_v58 = vmul.f32 %v918_v39, %v909_v46  ;;  %v780_v25 = vsel %vm770_vm7, nan, %v779_v51  ;;  %v1398_v49 = vsel %vm770_vm7, nan, %v1397_v42  ;;  %v1047_v20 = vshrl.u32 %v1029_v4, %v1045_v21  ;;  %v2237_v51 = vld [vmem:[%s2482_s18 + $0x10] sm:$0xff] }
 0x14d   : > { %v1050_v5 = vadd.s32 127, %v1049_v37  ;;  %v1791_v47 = vmul.f32 %v2233_v1, %v780_v25  ;;  %v1807_v54 = vmul.f32 %v1745_v59, %v1398_v49  ;;  %v1795_v6 = vmul.f32 %v2234_v15, %v780_v25  ;;  %v1772_v59 = vpop.f32.mrf.mxu2  ;;  %v2240_v1 = vld [vmem:[%s2482_s18 + $0x70] sm:$0xff] }
 0x14e   : > { %v1811_v43 = vmul.f32 %v1757_v14, %v1398_v49  ;;  %v1799_v32 = vmul.f32 %v2235_v53, %v780_v25  ;;  %v1815_v17 = vmul.f32 %v1769_v16, %v1398_v49  ;;  %v1803_v29 = vmul.f32 %v2236_v57, %v780_v25  ;;  %v1760_v0 = vpop.f32.mrf.mxu1  ;;  %v2239_v14 = vld [vmem:[%s2482_s18 + $0x50] sm:$0xff] }
 0x14f   : > { %v1819_v62 = vmul.f32 %v1781_v3, %v1398_v49  ;;  %v1823_v36 = vadd.f32 %v1807_v54, %v1791_v47  ;;  %v913_v55 = vadd.f32 -0.4999988, %v912_v56  ;;  %v920_v48 = vadd.f32 -0.16666654, %v919_v58  ;;  %v2238_v58 = vld [vmem:[%s2482_s18 + $0x30] sm:$0xff] }
 0x150   : > { %v1827_v38 = vadd.f32 %v1811_v43, %v1795_v6  ;;  %v1831_v2 = vadd.f32 %v1815_v17, %v1799_v32  ;;  %v1048_v26 = vor.u32 %v1047_v20, %v1046_v60  ;;  %v1051_v52 = vshll.u32 %v1050_v5, 23 }
 0x151   : > { %v1835_v9 = vadd.f32 %v1819_v62, %v1803_v29  ;;  %1839 = vst [vmem:[%s3192_s19 + $0x8] sm:$0xff] %v1823_v36  ;;  %v914_v44 = vmul.f32 %v913_v55, %v909_v46  ;;  %v921_v33 = vmul.f32 %v920_v48, %v909_v46  ;;  %v925_v12 = vand.u32 3, %v3159_v61 }
 0x152   : > { %1843 = vst [vmem:[%s3192_s19 + $0x28] sm:$0xff] %v1827_v38  ;;  %v1052_v31 = vor.u32 4788187, %v1051_v52  ;;  %v1544_v22 = vand.u32 3, %v1543_v40  ;;  %v1055_v7 = vcvt.s32.f32 %v1048_v26  ;;  %vm937_vm11 = vcmp.lt.s32.totalorder %v2626_v34, 0 }
 0x153   : > { %1847 = vst [vmem:[%s3192_s19 + $0x48] sm:$0xff] %v1831_v2  ;;  %v915_v28 = vadd.f32 1.0, %v914_v44  ;;  %v922_v41 = vadd.f32 1.0, %v921_v33  ;;  %vm924_vm3 = vweird.f32 %v2689_v30  ;;  %vm926_vm5 = vcmp.lt.s32.totalorder %v925_v12, 2  ;;  %v1784_v30 = vpop.f32.mrf.mxu3 }
 0x154   : > { %1851 = vst [vmem:[%s3192_s19 + $0x68] sm:$0xff] %v1835_v9  ;;  %v1053_v8 = vand.u32 2147483647, %v1052_v31  ;;  %vm927_vm15 = vcmp.eq.s32.totalorder %v925_v12, 0  ;;  %vm930_vm6 = vcmp.eq.s32.totalorder %v925_v12, 2  ;;  %vm1545_vm13 = vcmp.lt.s32.totalorder %v1544_v22, 2 }
 0x155   : > { %v923_v10 = vmul.f32 %v922_v41, %v3180_v50  ;;  %v931_v63 = vxor.u32 2147483648, %v915_v28  ;;  %vm1546_vm12 = vcmp.eq.s32.totalorder %v1544_v22, 0  ;;  %vm1549_vm0 = vcmp.eq.s32.totalorder %v1544_v22, 2 }
 0x156   : > { %v1056_v18 = vmul.f32 %v1055_v7, %v1053_v8  ;;  %v3371_v35 = vand.u32 2147483647, %v2626_v34  ;;  %v1059_v60 = vsub.s32 4, %v3132_v24  ;;  %vm1078_vm4 = vweird.f32 %v2626_v34 }
 0x157   : > { %v928_v46 = vxor.u32 2147483648, %v923_v10  ;;  %v932_v4 = vsel %vm930_vm6, %v931_v63, %v923_v10  ;;  %v1551_v50 = vsel %vm1549_vm0, %v931_v63, %v923_v10  ;;  %v1751_v10 = vpop.f32.mrf.mxu0  ;;  %v1763_v63 = vpop.f32.mrf.mxu1 }
 0x158   : > { %v1057_v61 = vxor.u32 2147483648, %v1056_v18  ;;  %vm3234_vm14 = vcmp.le.f32.partialorder %v3371_v35, 0.7853982  ;;  %v1060_v17 = vsel %vm937_vm11, %v1059_v60, %v3132_v24  ;;  %v2242_v35 = vld [vmem:[%s2482_s18 + $0x38] sm:$0xff] }
 0x159   : > { %v929_v11 = vsel %vm927_vm15, %v915_v28, %v928_v46  ;;  %v1548_v27 = vsel %vm1546_vm12, %v915_v28, %v928_v46  ;;  %v1062_v62 = vsel %vm3234_vm14, 0, %v1060_v17 }
 0x15a   : > { %v933_v23 = vsel %vm926_vm5, %v929_v11, %v932_v4  ;;  %v1552_v40 = vsel %vm1545_vm13, %v1548_v27, %v1551_v50  ;;  %v1058_v19 = vsel %vm937_vm11, %v1057_v61, %v1056_v18  ;;  %v1698_v2 = vadd.s32 3, %v1062_v62  ;;  %v1775_v61 = vpop.f32.mrf.mxu2  ;;  %v2241_v50 = vld [vmem:[%s2482_s18 + $0x18] sm:$0xff] }
 0x15b   : > { %v934_v39 = vsel %vm924_vm3, nan, %v933_v23  ;;  %v1553_v21 = vsel %vm924_vm3, nan, %v1552_v40  ;;  %v1061_v37 = vsel %vm3234_vm14, %v2626_v34, %v1058_v19  ;;  %v1079_v33 = vand.u32 3, %v1062_v62  ;;  %v1787_v11 = vpop.f32.mrf.mxu3 }
 0x15c   : > { %v1792_v42 = vmul.f32 %v2237_v51, %v934_v39  ;;  %v1808_v56 = vmul.f32 %v1748_v13, %v1553_v21  ;;  %v1796_v25 = vmul.f32 %v2238_v58, %v934_v39  ;;  %v1812_v49 = vmul.f32 %v1760_v0, %v1553_v21  ;;  %v2244_v13 = vld [vmem:[%s2482_s18 + $0x78] sm:$0xff] }
 0x15d   : > { %v1800_v20 = vmul.f32 %v2239_v14, %v934_v39  ;;  %v1816_v5 = vmul.f32 %v1772_v59, %v1553_v21  ;;  %v1804_v47 = vmul.f32 %v2240_v1, %v934_v39  ;;  %v1820_v54 = vmul.f32 %v1784_v30, %v1553_v21  ;;  %v2243_v39 = vld [vmem:[%s2482_s18 + $0x58] sm:$0xff] }
 0x15e   : > { %v1824_v15 = vadd.f32 %v1808_v56, %v1792_v42  ;;  %v1828_v6 = vadd.f32 %v1812_v49, %v1796_v25  ;;  %v1063_v43 = vmul.f32 %v1061_v37, %v1061_v37  ;;  %v1699_v31 = vand.u32 3, %v1698_v2 }
 0x15f   : > { %v1832_v16 = vadd.f32 %v1816_v5, %v1800_v20  ;;  %v1836_v3 = vadd.f32 %v1820_v54, %v1804_v47  ;;  %vm1080_vm1 = vcmp.lt.s32.totalorder %v1079_v33, 2  ;;  %vm1081_vm2 = vcmp.eq.s32.totalorder %v1079_v33, 0 }
 0x160   : > { %1840 = vst [vmem:[%s3192_s19 + $0x10] sm:$0xff] %v1824_v15  ;;  %v1064_v53 = vmul.f32 -0.001358992, %v1063_v43  ;;  %v1071_v32 = vmul.f32 -0.00019511016, %v1063_v43  ;;  %vm1084_vm7 = vcmp.eq.s32.totalorder %v1079_v33, 2 }
 0x161   : > { %1844 = vst [vmem:[%s3192_s19 + $0x30] sm:$0xff] %v1828_v6  ;;  %vm1700_vm8 = vcmp.lt.s32.totalorder %v1699_v31, 2  ;;  %vm1701_vm9 = vcmp.eq.s32.totalorder %v1699_v31, 0  ;;  %vm1704_vm10 = vcmp.eq.s32.totalorder %v1699_v31, 2 }
 0x162   : > { %1848 = vst [vmem:[%s3192_s19 + $0x50] sm:$0xff] %v1832_v16  ;;  %v1065_v57 = vadd.f32 0.041655596, %v1064_v53  ;;  %v1072_v29 = vadd.f32 0.008332121, %v1071_v32 }
 0x163   : > { %1852 = vst [vmem:[%s3192_s19 + $0x70] sm:$0xff] %v1836_v3 }
 0x164   : > { %v1066_v36 = vmul.f32 %v1065_v57, %v1063_v43  ;;  %v1073_v38 = vmul.f32 %v1072_v29, %v1063_v43 }
 0x166   : > { %v1067_v55 = vadd.f32 -0.4999988, %v1066_v36  ;;  %v1074_v48 = vadd.f32 -0.16666654, %v1073_v38 }
 0x168   : > { %v1068_v9 = vmul.f32 %v1067_v55, %v1063_v43  ;;  %v1075_v26 = vmul.f32 %v1074_v48, %v1063_v43 }
 0x16a   : > { %v1069_v52 = vadd.f32 1.0, %v1068_v9  ;;  %v1076_v44 = vadd.f32 1.0, %v1075_v26 }
 0x16c   : > { %v1077_v28 = vmul.f32 %v1076_v44, %v1061_v37  ;;  %v1085_v24 = vxor.u32 2147483648, %v1069_v52 }
 0x16e   : > { %v1082_v41 = vxor.u32 2147483648, %v1077_v28  ;;  %v1086_v22 = vsel %vm1084_vm7, %v1085_v24, %v1077_v28  ;;  %v1706_v7 = vsel %vm1704_vm10, %v1085_v24, %v1077_v28 }
 0x170   : > { %v1083_v12 = vsel %vm1081_vm2, %v1069_v52, %v1082_v41  ;;  %v1703_v8 = vsel %vm1701_vm9, %v1069_v52, %v1082_v41 }
 0x171   : > { %v1087_v18 = vsel %vm1080_vm1, %v1083_v12, %v1086_v22  ;;  %v1707_v46 = vsel %vm1700_vm8, %v1703_v8, %v1706_v7 }
 0x172   : > { %v1088_v4 = vsel %vm1078_vm4, nan, %v1087_v18  ;;  %v1708_v27 = vsel %vm1078_vm4, nan, %v1707_v46 }
 0x173   : > { %v1793_v23 = vmul.f32 %v2241_v50, %v1088_v4  ;;  %v1809_v40 = vmul.f32 %v1751_v10, %v1708_v27  ;;  %v1797_v45 = vmul.f32 %v2242_v35, %v1088_v4  ;;  %v1813_v19 = vmul.f32 %v1763_v63, %v1708_v27 }
 0x174   : > { %v1801_v34 = vmul.f32 %v2243_v39, %v1088_v4  ;;  %v1817_v21 = vmul.f32 %v1775_v61, %v1708_v27  ;;  %v1805_v0 = vmul.f32 %v2244_v13, %v1088_v4  ;;  %v1821_v60 = vmul.f32 %v1787_v11, %v1708_v27 }
 0x175   : > { %v1825_v37 = vadd.f32 %v1809_v40, %v1793_v23  ;;  %v1829_v51 = vadd.f32 %v1813_v19, %v1797_v45 }
 0x176   : > { %v1833_v42 = vadd.f32 %v1817_v21, %v1801_v34  ;;  %v1837_v56 = vadd.f32 %v1821_v60, %v1805_v0 }
 0x177   : > { %1841 = vst [vmem:[%s3192_s19 + $0x18] sm:$0xff] %v1825_v37 }
 0x178   : > { %1845 = vst [vmem:[%s3192_s19 + $0x38] sm:$0xff] %v1829_v51 }
 0x179   : > { %1849 = vst [vmem:[%s3192_s19 + $0x58] sm:$0xff] %v1833_v42 }
 0x17a   : > { %1853 = vst [vmem:[%s3192_s19 + $0x78] sm:$0xff] %v1837_v56 }
 0x17b   : > { %s2066_s29 = sshll.u32 %s2303_s25, 5  ;;  %s1879_s18 = sshll.u32 %s3192_s19, 4  ;;  %s1880_s18 = int_to_ptr.vmem [resolvable:$true] %s1879_s18 }
 0x17c   : > { %s1866_s8 = sadd.s32 %s2066_s29, %s2489_s27  ;;  %s2330_s7 = smov 512  }
 0x17d   : > { %s2067_s30 = sshll.u32 %s1866_s8, 3  ;;  %2127 = sst [smem:[#allocation9]] (%p2436_p9), %s2330_s7 }
 0x17e   : > { %s1868_s24 = scalar_lea.hbm %s3325_s6, %s2067_s30  ;;  %s2331_s13 = smov 1024  }
 0x17f   : > { %s1881_s9 = sshll.u32 %s1868_s24, 4  ;;  %2128 = sst [smem:[#allocation9 + $0x1]] (%p2436_p9), %s2331_s13  ;;  %s1882_s9 = int_to_ptr.hbm [resolvable:$true] %s1881_s9 }
 0x180   : > { %s2332_s25 = smov 4   ;;  %s2333_s27 = smov 128  }
 0x181   : > { %2129 = sst [smem:[#allocation9 + $0x2]] (%p2436_p9), %s2332_s25  ;;  %s2334_s14 = smov 8  }
 0x182   : > { %2130 = sst [smem:[#allocation9 + $0x3]] (%p2436_p9), %s2333_s27  ;;  %s2335_s11 = smov [#allocation8]  }
 0x183   : > { %2131 = sst [smem:[#allocation9 + $0x4]] (%p2436_p9), %s2333_s27  ;;  %s2336_s15 = smov 0  }
 0x184   : > { %2132 = sst [smem:[#allocation9 + $0x5]] (%p2436_p9), %s2334_s14 }
 0x185   : > { %2133 = dma.general (%p2436_p9), %s1880_s18, 2048, %s1882_s9, %s1855_s26, %s2335_s11, [#allocation9], %s2336_s15, 0  }
 0x186 PF: > { %p2139_p5 = scmp.ge.s32.totalorder %s2315_s28, 2  ;;  %s1909_s10 = sand.u32 1, %s2287_s21  }
 0x187   : > { %s1910_s20 = scalar_lea.sflag [#allocation4], %s1909_s10 }
 0x188   : > { %p2136_p6 = pnand %p2139_p5, %p2443_p12 }
 0x18a   : > { %p2137_p7 = pneg %p2136_p6 }
 0x18c   : > { %2282 = dma.done.wait (%p2137_p7), %s1910_s20, 2048  }
 0x18d   : > { %2284 = vsyncadd (%p2137_p7), %s1910_s20, 4294965248  ;;  %s22_s28 = sadd.s32 1, %s2315_s28   ;;  %s3374_s19 = sld [smem:[#allocation13_spill]] }
 0x18e   : > { %p19_p8 = scmp.ge.s32.totalorder %s22_s28, 6   ;;  %s3375_s23 = sld [smem:[#allocation18_spill]] }
 0x18f   : > { %s3376_s24 = sld [smem:[#allocation14_spill]]  ;;  %s3380_s21 = smov %s2291_s22 }
 0x190   : > { %s3377_s25 = sld [smem:[#allocation15_spill]]  ;;  %21 = sbr.rel (!%p19_p8) target bundleno = 7 (0x7), region = 105 }
 0x191   : > { %s3378_s26 = sld [smem:[#allocation16_spill]] }
 0x192   : > { %s3379_s27 = sld [smem:[#allocation17_spill]] }
 0x193   : > { %s3381_s22 = smov %s3374_s19 }
 0x195   :  { %1916 = vsyncpa [#allocation3], 1 }
 0x196   :  { %1918 = vsyncpa [#allocation3 + $0x1], 1 }
 0x197   :  { %1919 = vsyncpa [#allocation4], 1 }
 0x198   :  { %1921 = vsyncpa [#allocation4 + $0x1], 1 }

</bundles_post_ra>
